<compile_context>
chip_gen: v7x
topology: tpu7x:2x2x1
jax: 0.10.0
libtpu: 0.0.40
codegen_flags: <defaults>
</compile_context>

<pallas_src>
import functools
import math

import jax
import jax.numpy as jnp
from jax.experimental import pallas as pl
from jax.experimental.pallas import tpu as pltpu


# ---------------------------------------------------------------------------
# Per-generation tuning
# ---------------------------------------------------------------------------
def _device_kind():
    try:
        return jax.devices()[0].device_kind.lower()
    except Exception:
        return ""


_KIND = _device_kind()
if ("v5" in _KIND) or ("v6" in _KIND):
    VMEM_LIMIT = 96 * 1024 * 1024     # 128 MiB physical VMEM: allow big tiles
    ROW_TILE = 1024
else:                                  # v7x (64 MiB / TensorCore) or unknown
    VMEM_LIMIT = 48 * 1024 * 1024
    ROW_TILE = 512
N_TILE = 1024                          # lane-dim tile for linear outputs
K_TILE = 1024                          # contraction tile
ATTN_TQ = 256                          # flash-attention q tile
ATTN_TK = 512                          # flash-attention kv tile


def _params(dim_sems):
    return pltpu.CompilerParams(dimension_semantics=dim_sems,
                                vmem_limit_bytes=VMEM_LIMIT)


def _fit(tile, dim):
    """Largest tile that exactly divides `dim` (falls back to the full dim).
    Exact tiling keeps K-reduction / online-softmax accumulation free of
    padded garbage; realistic model dims should be 128/256-aligned anyway."""
    if dim <= tile or dim % tile == 0:
        return min(tile, dim)
    return dim


# ---------------------------------------------------------------------------
# Pallas kernels
# ---------------------------------------------------------------------------

def _linear_kernel(x_ref, w_ref, b_ref, o_ref, acc_ref, *, activation):
    """acc[i,j] += x[i,k] @ w[k,j]; bias (+ ReLU) epilogue at the last k step."""
    @pl.when(pl.program_id(2) == 0)
    def _():
        acc_ref[...] = jnp.zeros_like(acc_ref)

    acc_ref[...] += jnp.dot(x_ref[...], w_ref[...],
                            preferred_element_type=jnp.float32)

    @pl.when(pl.program_id(2) == pl.num_programs(2) - 1)
    def _():
        out = acc_ref[...] + b_ref[...]
        if activation == "relu":
            out = jnp.maximum(out, 0.0)
        o_ref[...] = out.astype(o_ref.dtype)


def linear(x, w, b=None, activation="none", out_dtype=jnp.bfloat16,
           tm=None, tn=N_TILE, tk=K_TILE):
    """x: (M, K) bf16, w: (K, N) bf16, b: (N,) f32 or None -> (M, N) out_dtype.

    Grid (M, N, K) with K innermost/"arbitrary" and an f32 VMEM accumulator,
    so large fc_hidden / vocab dims never require full-weight VMEM residency.
    The two leading axes are "parallel" (megacore / v7x friendly).
    """
    M, K = x.shape
    _, N = w.shape
    tm = _fit(ROW_TILE if tm is None else tm, M)
    tn = _fit(tn, N)
    tk = _fit(tk, K)
    b2 = jnp.zeros((1, N), jnp.float32) if b is None else b.reshape(1, N)
    return pl.pallas_call(
        functools.partial(_linear_kernel, activation=activation),
        out_shape=jax.ShapeDtypeStruct((M, N), out_dtype),
        grid=(pl.cdiv(M, tm), pl.cdiv(N, tn), pl.cdiv(K, tk)),
        in_specs=[
            pl.BlockSpec((tm, tk), lambda i, j, k: (i, k)),
            pl.BlockSpec((tk, tn), lambda i, j, k: (k, j)),
            pl.BlockSpec((1, tn), lambda i, j, k: (0, j)),
        ],
        out_specs=pl.BlockSpec((tm, tn), lambda i, j, k: (i, j)),
        scratch_shapes=[pltpu.VMEM((tm, tn), jnp.float32)],
        compiler_params=_params(("parallel", "parallel", "arbitrary")),
    )(x, w, b2)


def _linear_add_ln_kernel(x_ref, w_ref, b_ref, r_ref, g_ref, be_ref, o_ref,
                          acc_ref):
    """out = LayerNorm(x @ w + b + res), eps=1e-5; one-pass mean/var stats."""
    @pl.when(pl.program_id(1) == 0)
    def _():
        acc_ref[...] = jnp.zeros_like(acc_ref)

    acc_ref[...] += jnp.dot(x_ref[...], w_ref[...],
                            preferred_element_type=jnp.float32)

    @pl.when(pl.program_id(1) == pl.num_programs(1) - 1)
    def _():
        h = acc_ref[...] + b_ref[...] + r_ref[...].astype(jnp.float32)
        inv_n = 1.0 / h.shape[-1]
        mean = jnp.sum(h, axis=-1, keepdims=True) * inv_n
        mean_sq = jnp.sum(h * h, axis=-1, keepdims=True) * inv_n
        var = mean_sq - mean * mean            # single cross-lane pass
        y = (h - mean) * jax.lax.rsqrt(var + 1e-5)
        o_ref[...] = (y * g_ref[...] + be_ref[...]).astype(o_ref.dtype)


def linear_add_layernorm(x, w, b, res, gamma, beta, tm=None, tk=K_TILE):
    """Fused LayerNorm(x @ w + b + res).  LayerNorm needs the full feature
    row, so the grid is (M, K) with the whole (moderate) out_size resident."""
    M, K = x.shape
    _, N = w.shape
    tm = _fit(ROW_TILE if tm is None else tm, M)
    tk = _fit(tk, K)
    return pl.pallas_call(
        _linear_add_ln_kernel,
        out_shape=jax.ShapeDtypeStruct((M, N), jnp.bfloat16),
        grid=(pl.cdiv(M, tm), pl.cdiv(K, tk)),
        in_specs=[
            pl.BlockSpec((tm, tk), lambda i, k: (i, k)),
            pl.BlockSpec((tk, N), lambda i, k: (k, 0)),
            pl.BlockSpec((1, N), lambda i, k: (0, 0)),
            pl.BlockSpec((tm, N), lambda i, k: (i, 0)),
            pl.BlockSpec((1, N), lambda i, k: (0, 0)),
            pl.BlockSpec((1, N), lambda i, k: (0, 0)),
        ],
        out_specs=pl.BlockSpec((tm, N), lambda i, k: (i, 0)),
        scratch_shapes=[pltpu.VMEM((tm, N), jnp.float32)],
        compiler_params=_params(("parallel", "arbitrary")),
    )(x, w, b.reshape(1, N), res, gamma.reshape(1, N), beta.reshape(1, N))
# TODO(synk): the grid-constant bias/gamma/beta blocks could use
# pipeline_mode=pl.Buffered(1) to drop their second buffer; left at the default
# double-buffering here to keep lowering maximally portable.


def _flash_mha_kernel(q_ref, k_ref, v_ref, o_ref, m_sc, l_sc, acc_sc, *,
                      causal, tq, tk):
    """One (batch, head, q-tile) program; kv tiles reduced with online softmax.
    The 1/sqrt(head_dim) scale is folded into the Q projection weights, and the
    mask/max/exp path stays in f32 (-1e30 additive mask is only safe in f32)."""
    qi = pl.program_id(2)
    ki = pl.program_id(3)

    @pl.when(ki == 0)
    def _():
        m_sc[...] = jnp.full_like(m_sc, -1e30)
        l_sc[...] = jnp.zeros_like(l_sc)
        acc_sc[...] = jnp.zeros_like(acc_sc)

    def _block():
        q = q_ref[0, 0]                                   # (tq, Dh) bf16
        k = k_ref[0, 0]                                   # (tk, Dh) bf16
        s = jax.lax.dot_general(q, k, (((1,), (1,)), ((), ())),
                                preferred_element_type=jnp.float32)
        if causal:
            row = jax.lax.broadcasted_iota(jnp.int32, s.shape, 0) + qi * tq
            col = jax.lax.broadcasted_iota(jnp.int32, s.shape, 1) + ki * tk
            s = jnp.where(col <= row, s, -1e30)
        m_prev = m_sc[...]
        m_new = jnp.maximum(m_prev, jnp.max(s, axis=-1, keepdims=True))
        alpha = jnp.exp(m_prev - m_new)
        p = jnp.exp(s - m_new)
        l_sc[...] = alpha * l_sc[...] + jnp.sum(p, axis=-1, keepdims=True)
        acc_sc[...] = alpha * acc_sc[...] + jnp.dot(
            p.astype(jnp.bfloat16), v_ref[0, 0],
            preferred_element_type=jnp.float32)
        m_sc[...] = m_new

    if causal:
        # Skip kv tiles strictly in the future of this q tile.
        pl.when(ki * tk <= qi * tq + (tq - 1))(_block)
    else:
        _block()

    @pl.when(ki == pl.num_programs(3) - 1)
    def _():
        inv = pl.reciprocal(l_sc[...], approx=True)
        o_ref[0, 0] = (acc_sc[...] * inv).astype(o_ref.dtype)


def flash_attention(q, k, v, *, causal, tq=ATTN_TQ, tk=ATTN_TK):
    """q: (B, H, Sq, Dh), k/v: (B, H, Sk, Dh) bf16 (head-major, lane-dense per
    head) -> (B, H, Sq, Dh) bf16.  (B, H, Sq-tiles) axes are parallel; the
    kv-tile axis is the innermost "arbitrary" online-softmax reduction."""
    B, H, Sq, Dh = q.shape
    Sk = k.shape[2]
    tq = _fit(tq, Sq)
    tk = _fit(tk, Sk)
    return pl.pallas_call(
        functools.partial(_flash_mha_kernel, causal=causal, tq=tq, tk=tk),
        out_shape=jax.ShapeDtypeStruct((B, H, Sq, Dh), jnp.bfloat16),
        grid=(B, H, pl.cdiv(Sq, tq), pl.cdiv(Sk, tk)),
        in_specs=[
            pl.BlockSpec((1, 1, tq, Dh), lambda b, h, i, j: (b, h, i, 0)),
            pl.BlockSpec((1, 1, tk, Dh), lambda b, h, i, j: (b, h, j, 0)),
            pl.BlockSpec((1, 1, tk, Dh), lambda b, h, i, j: (b, h, j, 0)),
        ],
        out_specs=pl.BlockSpec((1, 1, tq, Dh), lambda b, h, i, j: (b, h, i, 0)),
        scratch_shapes=[
            pltpu.VMEM((tq, 1), jnp.float32),      # running max
            pltpu.VMEM((tq, 1), jnp.float32),      # running denom
            pltpu.VMEM((tq, Dh), jnp.float32),     # running numerator
        ],
        compiler_params=_params(("parallel", "parallel", "parallel",
                                 "arbitrary")),
    )(q, k, v)


# ---------------------------------------------------------------------------
# Model components (wrappers around the kernels); all activations bf16
# ---------------------------------------------------------------------------

def decoder_block_fwd(p, enc_flat, enc_seq, x_flat, *, batch, seq, num_heads,
                      head_dim):
    B, S, S_enc = batch, seq, enc_seq
    HD = num_heads * head_dim

    # masked self-attention (fused QKV projection, head-major attention layout)
    qkv = linear(x_flat, p["wqkv"], p["bqkv"])                  # (B*S, 3*HD)
    qkv = qkv.reshape(B, S, 3, num_heads, head_dim).transpose(2, 0, 3, 1, 4)
    att = flash_attention(qkv[0], qkv[1], qkv[2], causal=True)  # (B, H, S, Dh)
    att = att.transpose(0, 2, 1, 3).reshape(B * S, HD)

    # residual (adapt_residual) + output projection + LayerNorm (dropout = id)
    res = x_flat if p["adapt_w"] is None else linear(x_flat, p["adapt_w"])
    h = linear_add_layernorm(att, p["wo"], p["bo"], res,
                             p["norm_g"], p["norm_b"])

    # encoder block: cross attention over encoder output + residual + LayerNorm
    q = linear(h, p["wq_c"], p["bq_c"])
    q = q.reshape(B, S, num_heads, head_dim).transpose(0, 2, 1, 3)
    kv = linear(enc_flat, p["wkv_c"], p["bkv_c"])
    kv = kv.reshape(B, S_enc, 2, num_heads, head_dim).transpose(2, 0, 3, 1, 4)
    catt = flash_attention(q, kv[0], kv[1], causal=False)
    catt = catt.transpose(0, 2, 1, 3).reshape(B * S, HD)
    h2 = linear_add_layernorm(catt, p["wo_c"], p["bo_c"], h,
                              p["enc_norm1_g"], p["enc_norm1_b"])

    # position-wise feed forward + residual + LayerNorm ------------------------
    ff = linear(h2, p["fc1_w"], p["fc1_b"], activation="relu")
    out = linear_add_layernorm(ff, p["fc2_w"], p["fc2_b"], h2,
                               p["enc_norm2_g"], p["enc_norm2_b"])
    return out
# TODO(synk): for tiny deployment shapes (a few dozen rows) the per-layer chain
# could be fused into 2-3 pallas_calls since all weights fit VMEM; at realistic
# shapes the tiled kernels above are the right structure.


def transformer_decoder(params, enc_out, tokens, *, num_heads, head_dim):
    B, S = tokens.shape
    B_e, S_enc, E = enc_out.shape
    # embedding gather + sinusoidal positional encoding (XLA glue: gather has
    # no rectangular-BlockSpec equivalent); dropout = identity in eval mode.
    emb = jnp.take(params["embedding"], tokens, axis=0)          # (B, S, in)
    x = emb + params["pe"][:S][None, :, :]
    x_flat = x.reshape(B * S, -1).astype(jnp.bfloat16)           # bf16 activ.
    enc_flat = enc_out.reshape(B_e * S_enc, E).astype(jnp.bfloat16)

    for lp in params["layers"]:
        x_flat = decoder_block_fwd(lp, enc_flat, S_enc, x_flat, batch=B,
                                   seq=S, num_heads=num_heads,
                                   head_dim=head_dim)

    logits = linear(x_flat, params["out_w"], params["out_b"],
                    out_dtype=jnp.float32)
    return logits.reshape(B, S, -1)


# ---------------------------------------------------------------------------
# Deterministic parameter initialization
# ---------------------------------------------------------------------------

def sinusoidal_pe(max_len, d):
    pos = jnp.arange(max_len, dtype=jnp.float32)[:, None]
    i = jnp.arange(0, d, 2, dtype=jnp.float32)[None, :]
    angle = pos / jnp.power(10000.0, i / d)
    pe = jnp.zeros((max_len, d), jnp.float32)
    pe = pe.at[:, 0::2].set(jnp.sin(angle))
    pe = pe.at[:, 1::2].set(jnp.cos(angle))
    return pe


def init_params(key, vocab, max_seq, in_size, out_size, head_size, num_heads,
                fc_hidden, enc_out_size, num_layers):
    keys = iter(jax.random.split(key, 8 + 16 * num_layers))
    scale = 1.0 / math.sqrt(head_size)     # folded into the Q projections

    def nrm_f32(shape):
        return 0.02 * jax.random.normal(next(keys), shape, jnp.float32)

    def nrm(shape):                         # MXU weights stored in bf16
        return nrm_f32(shape).astype(jnp.bfloat16)

    HD = num_heads * head_size
    params = {
        "embedding": nrm_f32((vocab, in_size)),
        "pe": sinusoidal_pe(max_seq, in_size),
        "out_w": nrm((out_size, vocab)),
        "out_b": jnp.zeros((vocab,), jnp.float32),
        "layers": [],
    }
    # NOTE: for best TPU perf, H*Dh / out_size / fc_hidden / vocab should be
    # multiples of 128 (256 on v6e/v7x); the tiny demo dims below are for a
    # fast functional check only.
    for i in range(num_layers):
        lin = in_size if i == 0 else out_size
        wq = nrm_f32((lin, HD)) * scale     # softmax scale folded in (q bias=0)
        wk = nrm_f32((lin, HD))
        wv = nrm_f32((lin, HD))
        lp = {
            # self-attention: fused q/k/v projection (head-major column order)
            "wqkv": jnp.concatenate([wq, wk, wv], axis=1).astype(jnp.bfloat16),
            "bqkv": jnp.zeros((3 * HD,), jnp.float32),
            "wo": nrm((HD, out_size)), "bo": jnp.zeros((out_size,), jnp.float32),
            "adapt_w": nrm((lin, out_size)) if lin != out_size else None,
            "norm_g": jnp.ones((out_size,), jnp.float32),
            "norm_b": jnp.zeros((out_size,), jnp.float32),
            # cross-attention: q from decoder state, fused k/v from encoder out
            "wq_c": (nrm_f32((out_size, HD)) * scale).astype(jnp.bfloat16),
            "bq_c": jnp.zeros((HD,), jnp.float32),
            "wkv_c": nrm((enc_out_size, 2 * HD)),
            "bkv_c": jnp.zeros((2 * HD,), jnp.float32),
            "wo_c": nrm((HD, out_size)),
            "bo_c": jnp.zeros((out_size,), jnp.float32),
            "enc_norm1_g": jnp.ones((out_size,), jnp.float32),
            "enc_norm1_b": jnp.zeros((out_size,), jnp.float32),
            # feed forward
            "fc1_w": nrm((out_size, fc_hidden)),
            "fc1_b": jnp.zeros((fc_hidden,), jnp.float32),
            "fc2_w": nrm((fc_hidden, out_size)),
            "fc2_b": jnp.zeros((out_size,), jnp.float32),
            "enc_norm2_g": jnp.ones((out_size,), jnp.float32),
            "enc_norm2_b": jnp.zeros((out_size,), jnp.float32),
        }
        params["layers"].append(lp)
    return params


# ---------------------------------------------------------------------------
# Main
# ---------------------------------------------------------------------------

if __name__ == "__main__":
    # small, forward-consistent shapes
    B, S, S_ENC = 2, 8, 8
    VOCAB, MAX_SEQ = 32, 16
    IN_SIZE, OUT_SIZE = 32, 32
    HEAD_SIZE, NUM_HEADS = 8, 4
    FC_HIDDEN, ENC_OUT_SIZE, NUM_LAYERS = 64, 32, 2

    key = jax.random.PRNGKey(0)
    k_tok, k_enc, k_par = jax.random.split(key, 3)

    tokens = jax.random.randint(k_tok, (B, S), 0, VOCAB, dtype=jnp.int32)
    encoder_output = jax.random.normal(k_enc, (B, S_ENC, ENC_OUT_SIZE),
                                       jnp.float32)

    params = init_params(k_par, VOCAB, MAX_SEQ, IN_SIZE, OUT_SIZE, HEAD_SIZE,
                         NUM_HEADS, FC_HIDDEN, ENC_OUT_SIZE, NUM_LAYERS)

    fwd = jax.jit(functools.partial(transformer_decoder,
                                    num_heads=NUM_HEADS, head_dim=HEAD_SIZE))
    logits = fwd(params, encoder_output, tokens)
    logits = jax.block_until_ready(logits)

    assert logits.shape == (B, S, VOCAB), logits.shape
    assert bool(jnp.all(jnp.isfinite(logits)))
    print("KERNEL_OK")
</pallas_src>

<mosaic_0001>
module attributes {stable_mosaic.version = 11 : i64} {
  func.func @_linear_kernel(%arg0: i32, %arg1: i32, %arg2: i32, %arg3: memref<16x32xbf16, #tpu.memory_space<vmem>>, %arg4: memref<32x96xbf16, #tpu.memory_space<vmem>>, %arg5: memref<1x96xf32, #tpu.memory_space<vmem>>, %arg6: memref<16x96xbf16, #tpu.memory_space<vmem>>, %arg7: memref<16x96xf32, #tpu.memory_space<vmem>>) attributes {dimension_semantics = [#tpu.dimension_semantics<parallel>, #tpu.dimension_semantics<parallel>, #tpu.dimension_semantics<arbitrary>], iteration_bounds = array<i64: 1, 1, 1>, scalar_prefetch = 0 : i64, scratch_operands = 1 : i64, tpu.core_type = #tpu.core_type<tc>, window_params = [{transform_indices = @transform_0, window_bounds = array<i64: 16, 32>}, {transform_indices = @transform_1, window_bounds = array<i64: 32, 96>}, {transform_indices = @transform_2, window_bounds = array<i64: 1, 96>}, {transform_indices = @transform_3, window_bounds = array<i64: 16, 96>}]} {
    %c0_i32 = arith.constant 0 : i32
    %0 = arith.cmpi eq, %arg2, %c0_i32 : i32
    %1 = arith.extui %0 : i1 to i32
    %c0_i32_0 = arith.constant 0 : i32
    %2 = arith.cmpi ne, %1, %c0_i32_0 : i32
    scf.if %2 {
      %cst_10 = arith.constant 0.000000e+00 : f32
      %12 = vector.broadcast %cst_10 : f32 to vector<16x96xf32>
      %c0_11 = arith.constant 0 : index
      %c0_12 = arith.constant 0 : index
      %13 = vector.load %arg7[%c0_11, %c0_12] : memref<16x96xf32, #tpu.memory_space<vmem>>, vector<16x96xf32>
      tpu.vector_store %arg7[%c0_11, %c0_12], %12 {strides = array<i32>} : memref<16x96xf32, #tpu.memory_space<vmem>>, vector<16x96xf32>,
    } else {
    }
    %c0 = arith.constant 0 : index
    %c0_1 = arith.constant 0 : index
    %3 = vector.load %arg7[%c0, %c0_1] : memref<16x96xf32, #tpu.memory_space<vmem>>, vector<16x96xf32>
    %c0_2 = arith.constant 0 : index
    %c0_3 = arith.constant 0 : index
    %4 = vector.load %arg3[%c0_2, %c0_3] : memref<16x32xbf16, #tpu.memory_space<vmem>>, vector<16x32xbf16>
    %c0_4 = arith.constant 0 : index
    %c0_5 = arith.constant 0 : index
    %5 = vector.load %arg4[%c0_4, %c0_5] : memref<32x96xbf16, #tpu.memory_space<vmem>>, vector<32x96xbf16>
    %cst = arith.constant dense<0.000000e+00> : vector<16x96xf32>
    %6 = tpu.matmul %4, %5, %cst {dimension_numbers = #tpu.dot_dimension_numbers<[1], [0], [0], [1], [0, 0, 1, 1], [], []>} : vector<16x32xbf16>, vector<32x96xbf16>, vector<16x96xf32> -> vector<16x96xf32>
    %7 = arith.addf %3, %6 : vector<16x96xf32>
    %c0_6 = arith.constant 0 : index
    %c0_7 = arith.constant 0 : index
    %8 = vector.load %arg7[%c0_6, %c0_7] : memref<16x96xf32, #tpu.memory_space<vmem>>, vector<16x96xf32>
    tpu.vector_store %arg7[%c0_6, %c0_7], %7 {strides = array<i32>} : memref<16x96xf32, #tpu.memory_space<vmem>>, vector<16x96xf32>,
    %c0_i32_8 = arith.constant 0 : i32
    %9 = arith.cmpi eq, %arg2, %c0_i32_8 : i32
    %10 = arith.extui %9 : i1 to i32
    %c0_i32_9 = arith.constant 0 : i32
    %11 = arith.cmpi ne, %10, %c0_i32_9 : i32
    scf.if %11 {
      %c0_10 = arith.constant 0 : index
      %c0_11 = arith.constant 0 : index
      %12 = vector.load %arg7[%c0_10, %c0_11] : memref<16x96xf32, #tpu.memory_space<vmem>>, vector<16x96xf32>
      %c0_12 = arith.constant 0 : index
      %c0_13 = arith.constant 0 : index
      %13 = vector.load %arg5[%c0_12, %c0_13] : memref<1x96xf32, #tpu.memory_space<vmem>>, vector<1x96xf32>
      %14 = vector.broadcast %13 : vector<1x96xf32> to vector<16x96xf32>
      %15 = arith.addf %12, %14 : vector<16x96xf32>
      %16 = arith.truncf %15 : vector<16x96xf32> to vector<16x96xbf16>
      %c0_14 = arith.constant 0 : index
      %c0_15 = arith.constant 0 : index
      %17 = vector.load %arg6[%c0_14, %c0_15] : memref<16x96xbf16, #tpu.memory_space<vmem>>, vector<16x96xbf16>
      tpu.vector_store %arg6[%c0_14, %c0_15], %16 {strides = array<i32>} : memref<16x96xbf16, #tpu.memory_space<vmem>>, vector<16x96xbf16>,
    } else {
    }
    return
  }
  func.func @transform_0(%arg0: i32, %arg1: i32, %arg2: i32) -> (i32, i32) {
    %c0_i32 = arith.constant 0 : i32
    return %arg0, %arg2 : i32, i32
  }
  func.func @transform_1(%arg0: i32, %arg1: i32, %arg2: i32) -> (i32, i32) {
    %c0_i32 = arith.constant 0 : i32
    return %arg2, %arg1 : i32, i32
  }
  func.func @transform_2(%arg0: i32, %arg1: i32, %arg2: i32) -> (i32, i32) {
    %c0_i32 = arith.constant 0 : i32
    %c0_i32_0 = arith.constant 0 : i32
    return %c0_i32, %arg1 : i32, i32
  }
  func.func @transform_3(%arg0: i32, %arg1: i32, %arg2: i32) -> (i32, i32) {
    %c0_i32 = arith.constant 0 : i32
    return %arg0, %arg1 : i32, i32
  }
}

module attributes {stable_mosaic.version = 11 : i64} {
  func.func @_linear_add_ln_kernel(%arg0: i32, %arg1: i32, %arg2: memref<16x32xbf16, #tpu.memory_space<vmem>>, %arg3: memref<32x32xbf16, #tpu.memory_space<vmem>>, %arg4: memref<1x32xf32, #tpu.memory_space<vmem>>, %arg5: memref<16x32xbf16, #tpu.memory_space<vmem>>, %arg6: memref<1x32xf32, #tpu.memory_space<vmem>>, %arg7: memref<1x32xf32, #tpu.memory_space<vmem>>, %arg8: memref<16x32xbf16, #tpu.memory_space<vmem>>, %arg9: memref<16x32xf32, #tpu.memory_space<vmem>>) attributes {dimension_semantics = [#tpu.dimension_semantics<parallel>, #tpu.dimension_semantics<arbitrary>], iteration_bounds = array<i64: 1, 1>, scalar_prefetch = 0 : i64, scratch_operands = 1 : i64, tpu.core_type = #tpu.core_type<tc>, window_params = [{transform_indices = @transform_0, window_bounds = array<i64: 16, 32>}, {transform_indices = @transform_1, window_bounds = array<i64: 32, 32>}, {pipeline_mode = #tpu.pipeline_mode<synchronous>, transform_indices = @transform_2, window_bounds = array<i64: 1, 32>}, {transform_indices = @transform_3, window_bounds = array<i64: 16, 32>}, {pipeline_mode = #tpu.pipeline_mode<synchronous>, transform_indices = @transform_4, window_bounds = array<i64: 1, 32>}, {pipeline_mode = #tpu.pipeline_mode<synchronous>, transform_indices = @transform_5, window_bounds = array<i64: 1, 32>}, {transform_indices = @transform_6, window_bounds = array<i64: 16, 32>}]} {
    %c0_i32 = arith.constant 0 : i32
    %0 = arith.cmpi eq, %arg1, %c0_i32 : i32
    %1 = arith.extui %0 : i1 to i32
    %c0_i32_0 = arith.constant 0 : i32
    %2 = arith.cmpi ne, %1, %c0_i32_0 : i32
    scf.if %2 {
      %cst_10 = arith.constant 0.000000e+00 : f32
      %12 = vector.broadcast %cst_10 : f32 to vector<16x32xf32>
      %c0_11 = arith.constant 0 : index
      %c0_12 = arith.constant 0 : index
      %13 = vector.load %arg9[%c0_11, %c0_12] : memref<16x32xf32, #tpu.memory_space<vmem>>, vector<16x32xf32>
      tpu.vector_store %arg9[%c0_11, %c0_12], %12 {strides = array<i32>} : memref<16x32xf32, #tpu.memory_space<vmem>>, vector<16x32xf32>,
    } else {
    }
    %c0 = arith.constant 0 : index
    %c0_1 = arith.constant 0 : index
    %3 = vector.load %arg9[%c0, %c0_1] : memref<16x32xf32, #tpu.memory_space<vmem>>, vector<16x32xf32>
    %c0_2 = arith.constant 0 : index
    %c0_3 = arith.constant 0 : index
    %4 = vector.load %arg2[%c0_2, %c0_3] : memref<16x32xbf16, #tpu.memory_space<vmem>>, vector<16x32xbf16>
    %c0_4 = arith.constant 0 : index
    %c0_5 = arith.constant 0 : index
    %5 = vector.load %arg3[%c0_4, %c0_5] : memref<32x32xbf16, #tpu.memory_space<vmem>>, vector<32x32xbf16>
    %cst = arith.constant dense<0.000000e+00> : vector<16x32xf32>
    %6 = tpu.matmul %4, %5, %cst {dimension_numbers = #tpu.dot_dimension_numbers<[1], [0], [0], [1], [0, 0, 1, 1], [], []>} : vector<16x32xbf16>, vector<32x32xbf16>, vector<16x32xf32> -> vector<16x32xf32>
    %7 = arith.addf %3, %6 : vector<16x32xf32>
    %c0_6 = arith.constant 0 : index
    %c0_7 = arith.constant 0 : index
    %8 = vector.load %arg9[%c0_6, %c0_7] : memref<16x32xf32, #tpu.memory_space<vmem>>, vector<16x32xf32>
    tpu.vector_store %arg9[%c0_6, %c0_7], %7 {strides = array<i32>} : memref<16x32xf32, #tpu.memory_space<vmem>>, vector<16x32xf32>,
    %c0_i32_8 = arith.constant 0 : i32
    %9 = arith.cmpi eq, %arg1, %c0_i32_8 : i32
    %10 = arith.extui %9 : i1 to i32
    %c0_i32_9 = arith.constant 0 : i32
    %11 = arith.cmpi ne, %10, %c0_i32_9 : i32
    scf.if %11 {
      %c0_10 = arith.constant 0 : index
      %c0_11 = arith.constant 0 : index
      %12 = vector.load %arg9[%c0_10, %c0_11] : memref<16x32xf32, #tpu.memory_space<vmem>>, vector<16x32xf32>
      %c0_12 = arith.constant 0 : index
      %c0_13 = arith.constant 0 : index
      %13 = vector.load %arg4[%c0_12, %c0_13] : memref<1x32xf32, #tpu.memory_space<vmem>>, vector<1x32xf32>
      %14 = vector.broadcast %13 : vector<1x32xf32> to vector<16x32xf32>
      %15 = arith.addf %12, %14 : vector<16x32xf32>
      %c0_14 = arith.constant 0 : index
      %c0_15 = arith.constant 0 : index
      %16 = vector.load %arg5[%c0_14, %c0_15] : memref<16x32xbf16, #tpu.memory_space<vmem>>, vector<16x32xbf16>
      %17 = arith.extf %16 : vector<16x32xbf16> to vector<16x32xf32>
      %18 = arith.addf %15, %17 : vector<16x32xf32>
      %cst_16 = arith.constant dense<0.000000e+00> : vector<16xf32>
      %19 = vector.multi_reduction <add>, %18, %cst_16 [1] : vector<16x32xf32> to vector<16xf32>
      %20 = vector.shape_cast %19 : vector<16xf32> to vector<16x1xf32>
      %cst_17 = arith.constant 3.125000e-02 : f32
      %21 = vector.broadcast %cst_17 : f32 to vector<16x1xf32>
      %22 = arith.mulf %20, %21 : vector<16x1xf32>
      %23 = arith.mulf %18, %18 : vector<16x32xf32>
      %cst_18 = arith.constant dense<0.000000e+00> : vector<16xf32>
      %24 = vector.multi_reduction <add>, %23, %cst_18 [1] : vector<16x32xf32> to vector<16xf32>
      %25 = vector.shape_cast %24 : vector<16xf32> to vector<16x1xf32>
      %cst_19 = arith.constant 3.125000e-02 : f32
      %26 = vector.broadcast %cst_19 : f32 to vector<16x1xf32>
      %27 = arith.mulf %25, %26 : vector<16x1xf32>
      %28 = arith.mulf %22, %22 : vector<16x1xf32>
      %29 = arith.subf %27, %28 : vector<16x1xf32>
      %30 = vector.broadcast %22 : vector<16x1xf32> to vector<16x32xf32>
      %31 = arith.subf %18, %30 : vector<16x32xf32>
      %cst_20 = arith.constant 9.99999974E-6 : f32
      %32 = vector.broadcast %cst_20 : f32 to vector<16x1xf32>
      %33 = arith.addf %29, %32 : vector<16x1xf32>
      %34 = math.rsqrt %33 : vector<16x1xf32>
      %35 = vector.broadcast %34 : vector<16x1xf32> to vector<16x32xf32>
      %36 = arith.mulf %31, %35 : vector<16x32xf32>
      %c0_21 = arith.constant 0 : index
      %c0_22 = arith.constant 0 : index
      %37 = vector.load %arg6[%c0_21, %c0_22] : memref<1x32xf32, #tpu.memory_space<vmem>>, vector<1x32xf32>
      %38 = vector.broadcast %37 : vector<1x32xf32> to vector<16x32xf32>
      %39 = arith.mulf %36, %38 : vector<16x32xf32>
      %c0_23 = arith.constant 0 : index
      %c0_24 = arith.constant 0 : index
      %40 = vector.load %arg7[%c0_23, %c0_24] : memref<1x32xf32, #tpu.memory_space<vmem>>, vector<1x32xf32>
      %41 = vector.broadcast %40 : vector<1x32xf32> to vector<16x32xf32>
      %42 = arith.addf %39, %41 : vector<16x32xf32>
      %43 = arith.truncf %42 : vector<16x32xf32> to vector<16x32xbf16>
      %c0_25 = arith.constant 0 : index
      %c0_26 = arith.constant 0 : index
      %44 = vector.load %arg8[%c0_25, %c0_26] : memref<16x32xbf16, #tpu.memory_space<vmem>>, vector<16x32xbf16>
      tpu.vector_store %arg8[%c0_25, %c0_26], %43 {strides = array<i32>} : memref<16x32xbf16, #tpu.memory_space<vmem>>, vector<16x32xbf16>,
    } else {
    }
    return
  }
  func.func @transform_0(%arg0: i32, %arg1: i32) -> (i32, i32) {
    %c0_i32 = arith.constant 0 : i32
    return %arg0, %arg1 : i32, i32
  }
  func.func @transform_1(%arg0: i32, %arg1: i32) -> (i32, i32) {
    %c0_i32 = arith.constant 0 : i32
    %c0_i32_0 = arith.constant 0 : i32
    return %arg1, %c0_i32 : i32, i32
  }
  func.func @transform_2(%arg0: i32, %arg1: i32) -> (i32, i32) {
    %c0_i32 = arith.constant 0 : i32
    %c0_i32_0 = arith.constant 0 : i32
    %c0_i32_1 = arith.constant 0 : i32
    return %c0_i32, %c0_i32_0 : i32, i32
  }
  func.func @transform_3(%arg0: i32, %arg1: i32) -> (i32, i32) {
    %c0_i32 = arith.constant 0 : i32
    %c0_i32_0 = arith.constant 0 : i32
    return %arg0, %c0_i32 : i32, i32
  }
  func.func @transform_4(%arg0: i32, %arg1: i32) -> (i32, i32) {
    %c0_i32 = arith.constant 0 : i32
    %c0_i32_0 = arith.constant 0 : i32
    %c0_i32_1 = arith.constant 0 : i32
    return %c0_i32, %c0_i32_0 : i32, i32
  }
  func.func @transform_5(%arg0: i32, %arg1: i32) -> (i32, i32) {
    %c0_i32 = arith.constant 0 : i32
    %c0_i32_0 = arith.constant 0 : i32
    %c0_i32_1 = arith.constant 0 : i32
    return %c0_i32, %c0_i32_0 : i32, i32
  }
  func.func @transform_6(%arg0: i32, %arg1: i32) -> (i32, i32) {
    %c0_i32 = arith.constant 0 : i32
    %c0_i32_0 = arith.constant 0 : i32
    return %arg0, %c0_i32 : i32, i32
  }
}

module attributes {stable_mosaic.version = 11 : i64} {
  func.func @_flash_mha_kernel(%arg0: i32, %arg1: i32, %arg2: i32, %arg3: i32, %arg4: memref<1x1x8x8xbf16, #tpu.memory_space<vmem>>, %arg5: memref<1x1x8x8xbf16, #tpu.memory_space<vmem>>, %arg6: memref<1x1x8x8xbf16, #tpu.memory_space<vmem>>, %arg7: memref<1x1x8x8xbf16, #tpu.memory_space<vmem>>, %arg8: memref<8x1xf32, #tpu.memory_space<vmem>>, %arg9: memref<8x1xf32, #tpu.memory_space<vmem>>, %arg10: memref<8x8xf32, #tpu.memory_space<vmem>>) attributes {dimension_semantics = [#tpu.dimension_semantics<parallel>, #tpu.dimension_semantics<parallel>, #tpu.dimension_semantics<parallel>, #tpu.dimension_semantics<arbitrary>], iteration_bounds = array<i64: 2, 4, 1, 1>, scalar_prefetch = 0 : i64, scratch_operands = 3 : i64, tpu.core_type = #tpu.core_type<tc>, window_params = [{transform_indices = @transform_0, window_bounds = array<i64: 1, 1, 8, 8>}, {transform_indices = @transform_1, window_bounds = array<i64: 1, 1, 8, 8>}, {transform_indices = @transform_2, window_bounds = array<i64: 1, 1, 8, 8>}, {transform_indices = @transform_3, window_bounds = array<i64: 1, 1, 8, 8>}]} {
    %c0_i32 = arith.constant 0 : i32
    %0 = arith.cmpi eq, %arg3, %c0_i32 : i32
    %1 = arith.extui %0 : i1 to i32
    %c0_i32_0 = arith.constant 0 : i32
    %2 = arith.cmpi ne, %1, %c0_i32_0 : i32
    scf.if %2 {
      %cst = arith.constant -1.000000e+30 : f32
      %12 = vector.broadcast %cst : f32 to vector<8x1xf32>
      %c0 = arith.constant 0 : index
      %c0_5 = arith.constant 0 : index
      %13 = vector.load %arg8[%c0, %c0_5] : memref<8x1xf32, #tpu.memory_space<vmem>>, vector<8x1xf32>
      tpu.vector_store %arg8[%c0, %c0_5], %12 {strides = array<i32>} : memref<8x1xf32, #tpu.memory_space<vmem>>, vector<8x1xf32>,
      %cst_6 = arith.constant 0.000000e+00 : f32
      %14 = vector.broadcast %cst_6 : f32 to vector<8x1xf32>
      %c0_7 = arith.constant 0 : index
      %c0_8 = arith.constant 0 : index
      %15 = vector.load %arg9[%c0_7, %c0_8] : memref<8x1xf32, #tpu.memory_space<vmem>>, vector<8x1xf32>
      tpu.vector_store %arg9[%c0_7, %c0_8], %14 {strides = array<i32>} : memref<8x1xf32, #tpu.memory_space<vmem>>, vector<8x1xf32>,
      %cst_9 = arith.constant 0.000000e+00 : f32
      %16 = vector.broadcast %cst_9 : f32 to vector<8x8xf32>
      %c0_10 = arith.constant 0 : index
      %c0_11 = arith.constant 0 : index
      %17 = vector.load %arg10[%c0_10, %c0_11] : memref<8x8xf32, #tpu.memory_space<vmem>>, vector<8x8xf32>
      tpu.vector_store %arg10[%c0_10, %c0_11], %16 {strides = array<i32>} : memref<8x8xf32, #tpu.memory_space<vmem>>, vector<8x8xf32>,
    } else {
    }
    %c8_i32 = arith.constant 8 : i32
    %3 = arith.muli %arg3, %c8_i32 : i32
    %c8_i32_1 = arith.constant 8 : i32
    %4 = arith.muli %arg2, %c8_i32_1 : i32
    %c7_i32 = arith.constant 7 : i32
    %5 = arith.addi %4, %c7_i32 : i32
    %6 = arith.cmpi sle, %3, %5 : i32
    %7 = arith.extui %6 : i1 to i32
    %c0_i32_2 = arith.constant 0 : i32
    %8 = arith.cmpi ne, %7, %c0_i32_2 : i32
    scf.if %8 {
      %c0 = arith.constant 0 : index
      %c0_5 = arith.constant 0 : index
      %c0_6 = arith.constant 0 : index
      %c0_7 = arith.constant 0 : index
      %12 = vector.load %arg4[%c0, %c0_5, %c0_6, %c0_7] : memref<1x1x8x8xbf16, #tpu.memory_space<vmem>>, vector<1x1x8x8xbf16>
      %13 = vector.shape_cast %12 : vector<1x1x8x8xbf16> to vector<8x8xbf16>
      %c0_8 = arith.constant 0 : index
      %c0_9 = arith.constant 0 : index
      %c0_10 = arith.constant 0 : index
      %c0_11 = arith.constant 0 : index
      %14 = vector.load %arg5[%c0_8, %c0_9, %c0_10, %c0_11] : memref<1x1x8x8xbf16, #tpu.memory_space<vmem>>, vector<1x1x8x8xbf16>
      %15 = vector.shape_cast %14 : vector<1x1x8x8xbf16> to vector<8x8xbf16>
      %cst = arith.constant dense<0.000000e+00> : vector<8x8xf32>
      %16 = tpu.matmul %13, %15, %cst {dimension_numbers = #tpu.dot_dimension_numbers<[1], [1], [0], [0], [0, 0, 1, 0], [], []>} : vector<8x8xbf16>, vector<8x8xbf16>, vector<8x8xf32> -> vector<8x8xf32>
      %17 = tpu.iota {dimensions = array<i32: 0>} : vector<8x8xi32>
      %c8_i32_12 = arith.constant 8 : i32
      %18 = arith.muli %arg2, %c8_i32_12 : i32
      %19 = vector.broadcast %18 : i32 to vector<8x8xi32>
      %20 = arith.addi %17, %19 : vector<8x8xi32>
      %21 = tpu.iota {dimensions = array<i32: 1>} : vector<8x8xi32>
      %c8_i32_13 = arith.constant 8 : i32
      %22 = arith.muli %arg3, %c8_i32_13 : i32
      %23 = vector.broadcast %22 : i32 to vector<8x8xi32>
      %24 = arith.addi %21, %23 : vector<8x8xi32>
      %25 = arith.cmpi sle, %24, %20 : vector<8x8xi32>
      %cst_14 = arith.constant -1.000000e+30 : f32
      %26 = vector.broadcast %cst_14 : f32 to vector<8x8xf32>
      %27 = arith.select %25, %16, %26 : vector<8x8xi1>, vector<8x8xf32>
      %c0_15 = arith.constant 0 : index
      %c0_16 = arith.constant 0 : index
      %28 = vector.load %arg8[%c0_15, %c0_16] : memref<8x1xf32, #tpu.memory_space<vmem>>, vector<8x1xf32>
      %cst_17 = arith.constant dense<0xFF800000> : vector<8xf32>
      %29 = vector.multi_reduction <maximumf>, %27, %cst_17 [1] : vector<8x8xf32> to vector<8xf32>
      %30 = vector.shape_cast %29 : vector<8xf32> to vector<8x1xf32>
      %31 = arith.maximumf %28, %30 : vector<8x1xf32>
      %32 = arith.subf %28, %31 : vector<8x1xf32>
      %33 = math.exp %32 : vector<8x1xf32>
      %34 = vector.broadcast %31 : vector<8x1xf32> to vector<8x8xf32>
      %35 = arith.subf %27, %34 : vector<8x8xf32>
      %36 = math.exp %35 : vector<8x8xf32>
      %c0_18 = arith.constant 0 : index
      %c0_19 = arith.constant 0 : index
      %37 = vector.load %arg9[%c0_18, %c0_19] : memref<8x1xf32, #tpu.memory_space<vmem>>, vector<8x1xf32>
      %38 = arith.mulf %33, %37 : vector<8x1xf32>
      %cst_20 = arith.constant dense<0.000000e+00> : vector<8xf32>
      %39 = vector.multi_reduction <add>, %36, %cst_20 [1] : vector<8x8xf32> to vector<8xf32>
      %40 = vector.shape_cast %39 : vector<8xf32> to vector<8x1xf32>
      %41 = arith.addf %38, %40 : vector<8x1xf32>
      %c0_21 = arith.constant 0 : index
      %c0_22 = arith.constant 0 : index
      %42 = vector.load %arg9[%c0_21, %c0_22] : memref<8x1xf32, #tpu.memory_space<vmem>>, vector<8x1xf32>
      tpu.vector_store %arg9[%c0_21, %c0_22], %41 {strides = array<i32>} : memref<8x1xf32, #tpu.memory_space<vmem>>, vector<8x1xf32>,
      %c0_23 = arith.constant 0 : index
      %c0_24 = arith.constant 0 : index
      %43 = vector.load %arg10[%c0_23, %c0_24] : memref<8x8xf32, #tpu.memory_space<vmem>>, vector<8x8xf32>
      %44 = vector.broadcast %33 : vector<8x1xf32> to vector<8x8xf32>
      %45 = arith.mulf %44, %43 : vector<8x8xf32>
      %46 = arith.truncf %36 : vector<8x8xf32> to vector<8x8xbf16>
      %c0_25 = arith.constant 0 : index
      %c0_26 = arith.constant 0 : index
      %c0_27 = arith.constant 0 : index
      %c0_28 = arith.constant 0 : index
      %47 = vector.load %arg6[%c0_25, %c0_26, %c0_27, %c0_28] : memref<1x1x8x8xbf16, #tpu.memory_space<vmem>>, vector<1x1x8x8xbf16>
      %48 = vector.shape_cast %47 : vector<1x1x8x8xbf16> to vector<8x8xbf16>
      %cst_29 = arith.constant dense<0.000000e+00> : vector<8x8xf32>
      %49 = tpu.matmul %46, %48, %cst_29 {dimension_numbers = #tpu.dot_dimension_numbers<[1], [0], [0], [1], [0, 0, 1, 1], [], []>} : vector<8x8xbf16>, vector<8x8xbf16>, vector<8x8xf32> -> vector<8x8xf32>
      %50 = arith.addf %45, %49 : vector<8x8xf32>
      %c0_30 = arith.constant 0 : index
      %c0_31 = arith.constant 0 : index
      %51 = vector.load %arg10[%c0_30, %c0_31] : memref<8x8xf32, #tpu.memory_space<vmem>>, vector<8x8xf32>
      tpu.vector_store %arg10[%c0_30, %c0_31], %50 {strides = array<i32>} : memref<8x8xf32, #tpu.memory_space<vmem>>, vector<8x8xf32>,
      %c0_32 = arith.constant 0 : index
      %c0_33 = arith.constant 0 : index
      %52 = vector.load %arg8[%c0_32, %c0_33] : memref<8x1xf32, #tpu.memory_space<vmem>>, vector<8x1xf32>
      tpu.vector_store %arg8[%c0_32, %c0_33], %31 {strides = array<i32>} : memref<8x1xf32, #tpu.memory_space<vmem>>, vector<8x1xf32>,
    } else {
    }
    %c0_i32_3 = arith.constant 0 : i32
    %9 = arith.cmpi eq, %arg3, %c0_i32_3 : i32
    %10 = arith.extui %9 : i1 to i32
    %c0_i32_4 = arith.constant 0 : i32
    %11 = arith.cmpi ne, %10, %c0_i32_4 : i32
    scf.if %11 {
      %c0 = arith.constant 0 : index
      %c0_5 = arith.constant 0 : index
      %12 = vector.load %arg9[%c0, %c0_5] : memref<8x1xf32, #tpu.memory_space<vmem>>, vector<8x1xf32>
      %13 = tpu.reciprocal %12 {approx = true} : vector<8x1xf32> -> vector<8x1xf32>
      %c0_6 = arith.constant 0 : index
      %c0_7 = arith.constant 0 : index
      %14 = vector.load %arg10[%c0_6, %c0_7] : memref<8x8xf32, #tpu.memory_space<vmem>>, vector<8x8xf32>
      %15 = vector.broadcast %13 : vector<8x1xf32> to vector<8x8xf32>
      %16 = arith.mulf %14, %15 : vector<8x8xf32>
      %17 = arith.truncf %16 : vector<8x8xf32> to vector<8x8xbf16>
      %c0_8 = arith.constant 0 : index
      %c0_9 = arith.constant 0 : index
      %c0_10 = arith.constant 0 : index
      %c0_11 = arith.constant 0 : index
      %18 = vector.load %arg7[%c0_8, %c0_9, %c0_10, %c0_11] : memref<1x1x8x8xbf16, #tpu.memory_space<vmem>>, vector<1x1x8x8xbf16>
      %19 = vector.shape_cast %18 : vector<1x1x8x8xbf16> to vector<8x8xbf16>
      %20 = vector.shape_cast %17 : vector<8x8xbf16> to vector<1x1x8x8xbf16>
      tpu.vector_store %arg7[%c0_8, %c0_9, %c0_10, %c0_11], %20 {strides = array<i32>} : memref<1x1x8x8xbf16, #tpu.memory_space<vmem>>, vector<1x1x8x8xbf16>,
    } else {
    }
    return
  }
  func.func @transform_0(%arg0: i32, %arg1: i32, %arg2: i32, %arg3: i32) -> (i32, i32, i32, i32) {
    %c0_i32 = arith.constant 0 : i32
    %c0_i32_0 = arith.constant 0 : i32
    return %arg0, %arg1, %arg2, %c0_i32 : i32, i32, i32, i32
  }
  func.func @transform_1(%arg0: i32, %arg1: i32, %arg2: i32, %arg3: i32) -> (i32, i32, i32, i32) {
    %c0_i32 = arith.constant 0 : i32
    %c0_i32_0 = arith.constant 0 : i32
    return %arg0, %arg1, %arg3, %c0_i32 : i32, i32, i32, i32
  }
  func.func @transform_2(%arg0: i32, %arg1: i32, %arg2: i32, %arg3: i32) -> (i32, i32, i32, i32) {
    %c0_i32 = arith.constant 0 : i32
    %c0_i32_0 = arith.constant 0 : i32
    return %arg0, %arg1, %arg3, %c0_i32 : i32, i32, i32, i32
  }
  func.func @transform_3(%arg0: i32, %arg1: i32, %arg2: i32, %arg3: i32) -> (i32, i32, i32, i32) {
    %c0_i32 = arith.constant 0 : i32
    %c0_i32_0 = arith.constant 0 : i32
    return %arg0, %arg1, %arg2, %c0_i32 : i32, i32, i32, i32
  }
}

module attributes {stable_mosaic.version = 11 : i64} {
  func.func @_linear_kernel(%arg0: i32, %arg1: i32, %arg2: i32, %arg3: memref<16x32xbf16, #tpu.memory_space<vmem>>, %arg4: memref<32x32xbf16, #tpu.memory_space<vmem>>, %arg5: memref<1x32xf32, #tpu.memory_space<vmem>>, %arg6: memref<16x32xbf16, #tpu.memory_space<vmem>>, %arg7: memref<16x32xf32, #tpu.memory_space<vmem>>) attributes {dimension_semantics = [#tpu.dimension_semantics<parallel>, #tpu.dimension_semantics<parallel>, #tpu.dimension_semantics<arbitrary>], iteration_bounds = array<i64: 1, 1, 1>, scalar_prefetch = 0 : i64, scratch_operands = 1 : i64, tpu.core_type = #tpu.core_type<tc>, window_params = [{transform_indices = @transform_0, window_bounds = array<i64: 16, 32>}, {transform_indices = @transform_1, window_bounds = array<i64: 32, 32>}, {transform_indices = @transform_2, window_bounds = array<i64: 1, 32>}, {transform_indices = @transform_3, window_bounds = array<i64: 16, 32>}]} {
    %c0_i32 = arith.constant 0 : i32
    %0 = arith.cmpi eq, %arg2, %c0_i32 : i32
    %1 = arith.extui %0 : i1 to i32
    %c0_i32_0 = arith.constant 0 : i32
    %2 = arith.cmpi ne, %1, %c0_i32_0 : i32
    scf.if %2 {
      %cst_10 = arith.constant 0.000000e+00 : f32
      %12 = vector.broadcast %cst_10 : f32 to vector<16x32xf32>
      %c0_11 = arith.constant 0 : index
      %c0_12 = arith.constant 0 : index
      %13 = vector.load %arg7[%c0_11, %c0_12] : memref<16x32xf32, #tpu.memory_space<vmem>>, vector<16x32xf32>
      tpu.vector_store %arg7[%c0_11, %c0_12], %12 {strides = array<i32>} : memref<16x32xf32, #tpu.memory_space<vmem>>, vector<16x32xf32>,
    } else {
    }
    %c0 = arith.constant 0 : index
    %c0_1 = arith.constant 0 : index
    %3 = vector.load %arg7[%c0, %c0_1] : memref<16x32xf32, #tpu.memory_space<vmem>>, vector<16x32xf32>
    %c0_2 = arith.constant 0 : index
    %c0_3 = arith.constant 0 : index
    %4 = vector.load %arg3[%c0_2, %c0_3] : memref<16x32xbf16, #tpu.memory_space<vmem>>, vector<16x32xbf16>
    %c0_4 = arith.constant 0 : index
    %c0_5 = arith.constant 0 : index
    %5 = vector.load %arg4[%c0_4, %c0_5] : memref<32x32xbf16, #tpu.memory_space<vmem>>, vector<32x32xbf16>
    %cst = arith.constant dense<0.000000e+00> : vector<16x32xf32>
    %6 = tpu.matmul %4, %5, %cst {dimension_numbers = #tpu.dot_dimension_numbers<[1], [0], [0], [1], [0, 0, 1, 1], [], []>} : vector<16x32xbf16>, vector<32x32xbf16>, vector<16x32xf32> -> vector<16x32xf32>
    %7 = arith.addf %3, %6 : vector<16x32xf32>
    %c0_6 = arith.constant 0 : index
    %c0_7 = arith.constant 0 : index
    %8 = vector.load %arg7[%c0_6, %c0_7] : memref<16x32xf32, #tpu.memory_space<vmem>>, vector<16x32xf32>
    tpu.vector_store %arg7[%c0_6, %c0_7], %7 {strides = array<i32>} : memref<16x32xf32, #tpu.memory_space<vmem>>, vector<16x32xf32>,
    %c0_i32_8 = arith.constant 0 : i32
    %9 = arith.cmpi eq, %arg2, %c0_i32_8 : i32
    %10 = arith.extui %9 : i1 to i32
    %c0_i32_9 = arith.constant 0 : i32
    %11 = arith.cmpi ne, %10, %c0_i32_9 : i32
    scf.if %11 {
      %c0_10 = arith.constant 0 : index
      %c0_11 = arith.constant 0 : index
      %12 = vector.load %arg7[%c0_10, %c0_11] : memref<16x32xf32, #tpu.memory_space<vmem>>, vector<16x32xf32>
      %c0_12 = arith.constant 0 : index
      %c0_13 = arith.constant 0 : index
      %13 = vector.load %arg5[%c0_12, %c0_13] : memref<1x32xf32, #tpu.memory_space<vmem>>, vector<1x32xf32>
      %14 = vector.broadcast %13 : vector<1x32xf32> to vector<16x32xf32>
      %15 = arith.addf %12, %14 : vector<16x32xf32>
      %16 = arith.truncf %15 : vector<16x32xf32> to vector<16x32xbf16>
      %c0_14 = arith.constant 0 : index
      %c0_15 = arith.constant 0 : index
      %17 = vector.load %arg6[%c0_14, %c0_15] : memref<16x32xbf16, #tpu.memory_space<vmem>>, vector<16x32xbf16>
      tpu.vector_store %arg6[%c0_14, %c0_15], %16 {strides = array<i32>} : memref<16x32xbf16, #tpu.memory_space<vmem>>, vector<16x32xbf16>,
    } else {
    }
    return
  }
  func.func @transform_0(%arg0: i32, %arg1: i32, %arg2: i32) -> (i32, i32) {
    %c0_i32 = arith.constant 0 : i32
    return %arg0, %arg2 : i32, i32
  }
  func.func @transform_1(%arg0: i32, %arg1: i32, %arg2: i32) -> (i32, i32) {
    %c0_i32 = arith.constant 0 : i32
    return %arg2, %arg1 : i32, i32
  }
  func.func @transform_2(%arg0: i32, %arg1: i32, %arg2: i32) -> (i32, i32) {
    %c0_i32 = arith.constant 0 : i32
    %c0_i32_0 = arith.constant 0 : i32
    return %c0_i32, %arg1 : i32, i32
  }
  func.func @transform_3(%arg0: i32, %arg1: i32, %arg2: i32) -> (i32, i32) {
    %c0_i32 = arith.constant 0 : i32
    return %arg0, %arg1 : i32, i32
  }
}

module attributes {stable_mosaic.version = 11 : i64} {
  func.func @_linear_kernel(%arg0: i32, %arg1: i32, %arg2: i32, %arg3: memref<16x32xbf16, #tpu.memory_space<vmem>>, %arg4: memref<32x64xbf16, #tpu.memory_space<vmem>>, %arg5: memref<1x64xf32, #tpu.memory_space<vmem>>, %arg6: memref<16x64xbf16, #tpu.memory_space<vmem>>, %arg7: memref<16x64xf32, #tpu.memory_space<vmem>>) attributes {dimension_semantics = [#tpu.dimension_semantics<parallel>, #tpu.dimension_semantics<parallel>, #tpu.dimension_semantics<arbitrary>], iteration_bounds = array<i64: 1, 1, 1>, scalar_prefetch = 0 : i64, scratch_operands = 1 : i64, tpu.core_type = #tpu.core_type<tc>, window_params = [{transform_indices = @transform_0, window_bounds = array<i64: 16, 32>}, {transform_indices = @transform_1, window_bounds = array<i64: 32, 64>}, {transform_indices = @transform_2, window_bounds = array<i64: 1, 64>}, {transform_indices = @transform_3, window_bounds = array<i64: 16, 64>}]} {
    %c0_i32 = arith.constant 0 : i32
    %0 = arith.cmpi eq, %arg2, %c0_i32 : i32
    %1 = arith.extui %0 : i1 to i32
    %c0_i32_0 = arith.constant 0 : i32
    %2 = arith.cmpi ne, %1, %c0_i32_0 : i32
    scf.if %2 {
      %cst_10 = arith.constant 0.000000e+00 : f32
      %12 = vector.broadcast %cst_10 : f32 to vector<16x64xf32>
      %c0_11 = arith.constant 0 : index
      %c0_12 = arith.constant 0 : index
      %13 = vector.load %arg7[%c0_11, %c0_12] : memref<16x64xf32, #tpu.memory_space<vmem>>, vector<16x64xf32>
      tpu.vector_store %arg7[%c0_11, %c0_12], %12 {strides = array<i32>} : memref<16x64xf32, #tpu.memory_space<vmem>>, vector<16x64xf32>,
    } else {
    }
    %c0 = arith.constant 0 : index
    %c0_1 = arith.constant 0 : index
    %3 = vector.load %arg7[%c0, %c0_1] : memref<16x64xf32, #tpu.memory_space<vmem>>, vector<16x64xf32>
    %c0_2 = arith.constant 0 : index
    %c0_3 = arith.constant 0 : index
    %4 = vector.load %arg3[%c0_2, %c0_3] : memref<16x32xbf16, #tpu.memory_space<vmem>>, vector<16x32xbf16>
    %c0_4 = arith.constant 0 : index
    %c0_5 = arith.constant 0 : index
    %5 = vector.load %arg4[%c0_4, %c0_5] : memref<32x64xbf16, #tpu.memory_space<vmem>>, vector<32x64xbf16>
    %cst = arith.constant dense<0.000000e+00> : vector<16x64xf32>
    %6 = tpu.matmul %4, %5, %cst {dimension_numbers = #tpu.dot_dimension_numbers<[1], [0], [0], [1], [0, 0, 1, 1], [], []>} : vector<16x32xbf16>, vector<32x64xbf16>, vector<16x64xf32> -> vector<16x64xf32>
    %7 = arith.addf %3, %6 : vector<16x64xf32>
    %c0_6 = arith.constant 0 : index
    %c0_7 = arith.constant 0 : index
    %8 = vector.load %arg7[%c0_6, %c0_7] : memref<16x64xf32, #tpu.memory_space<vmem>>, vector<16x64xf32>
    tpu.vector_store %arg7[%c0_6, %c0_7], %7 {strides = array<i32>} : memref<16x64xf32, #tpu.memory_space<vmem>>, vector<16x64xf32>,
    %c0_i32_8 = arith.constant 0 : i32
    %9 = arith.cmpi eq, %arg2, %c0_i32_8 : i32
    %10 = arith.extui %9 : i1 to i32
    %c0_i32_9 = arith.constant 0 : i32
    %11 = arith.cmpi ne, %10, %c0_i32_9 : i32
    scf.if %11 {
      %c0_10 = arith.constant 0 : index
      %c0_11 = arith.constant 0 : index
      %12 = vector.load %arg7[%c0_10, %c0_11] : memref<16x64xf32, #tpu.memory_space<vmem>>, vector<16x64xf32>
      %c0_12 = arith.constant 0 : index
      %c0_13 = arith.constant 0 : index
      %13 = vector.load %arg5[%c0_12, %c0_13] : memref<1x64xf32, #tpu.memory_space<vmem>>, vector<1x64xf32>
      %14 = vector.broadcast %13 : vector<1x64xf32> to vector<16x64xf32>
      %15 = arith.addf %12, %14 : vector<16x64xf32>
      %16 = arith.truncf %15 : vector<16x64xf32> to vector<16x64xbf16>
      %c0_14 = arith.constant 0 : index
      %c0_15 = arith.constant 0 : index
      %17 = vector.load %arg6[%c0_14, %c0_15] : memref<16x64xbf16, #tpu.memory_space<vmem>>, vector<16x64xbf16>
      tpu.vector_store %arg6[%c0_14, %c0_15], %16 {strides = array<i32>} : memref<16x64xbf16, #tpu.memory_space<vmem>>, vector<16x64xbf16>,
    } else {
    }
    return
  }
  func.func @transform_0(%arg0: i32, %arg1: i32, %arg2: i32) -> (i32, i32) {
    %c0_i32 = arith.constant 0 : i32
    return %arg0, %arg2 : i32, i32
  }
  func.func @transform_1(%arg0: i32, %arg1: i32, %arg2: i32) -> (i32, i32) {
    %c0_i32 = arith.constant 0 : i32
    return %arg2, %arg1 : i32, i32
  }
  func.func @transform_2(%arg0: i32, %arg1: i32, %arg2: i32) -> (i32, i32) {
    %c0_i32 = arith.constant 0 : i32
    %c0_i32_0 = arith.constant 0 : i32
    return %c0_i32, %arg1 : i32, i32
  }
  func.func @transform_3(%arg0: i32, %arg1: i32, %arg2: i32) -> (i32, i32) {
    %c0_i32 = arith.constant 0 : i32
    return %arg0, %arg1 : i32, i32
  }
}

module attributes {stable_mosaic.version = 11 : i64} {
  func.func @_flash_mha_kernel(%arg0: i32, %arg1: i32, %arg2: i32, %arg3: i32, %arg4: memref<1x1x8x8xbf16, #tpu.memory_space<vmem>>, %arg5: memref<1x1x8x8xbf16, #tpu.memory_space<vmem>>, %arg6: memref<1x1x8x8xbf16, #tpu.memory_space<vmem>>, %arg7: memref<1x1x8x8xbf16, #tpu.memory_space<vmem>>, %arg8: memref<8x1xf32, #tpu.memory_space<vmem>>, %arg9: memref<8x1xf32, #tpu.memory_space<vmem>>, %arg10: memref<8x8xf32, #tpu.memory_space<vmem>>) attributes {dimension_semantics = [#tpu.dimension_semantics<parallel>, #tpu.dimension_semantics<parallel>, #tpu.dimension_semantics<parallel>, #tpu.dimension_semantics<arbitrary>], iteration_bounds = array<i64: 2, 4, 1, 1>, scalar_prefetch = 0 : i64, scratch_operands = 3 : i64, tpu.core_type = #tpu.core_type<tc>, window_params = [{transform_indices = @transform_0, window_bounds = array<i64: 1, 1, 8, 8>}, {transform_indices = @transform_1, window_bounds = array<i64: 1, 1, 8, 8>}, {transform_indices = @transform_2, window_bounds = array<i64: 1, 1, 8, 8>}, {transform_indices = @transform_3, window_bounds = array<i64: 1, 1, 8, 8>}]} {
    %c0_i32 = arith.constant 0 : i32
    %0 = arith.cmpi eq, %arg3, %c0_i32 : i32
    %1 = arith.extui %0 : i1 to i32
    %c0_i32_0 = arith.constant 0 : i32
    %2 = arith.cmpi ne, %1, %c0_i32_0 : i32
    scf.if %2 {
      %cst_29 = arith.constant -1.000000e+30 : f32
      %36 = vector.broadcast %cst_29 : f32 to vector<8x1xf32>
      %c0_30 = arith.constant 0 : index
      %c0_31 = arith.constant 0 : index
      %37 = vector.load %arg8[%c0_30, %c0_31] : memref<8x1xf32, #tpu.memory_space<vmem>>, vector<8x1xf32>
      tpu.vector_store %arg8[%c0_30, %c0_31], %36 {strides = array<i32>} : memref<8x1xf32, #tpu.memory_space<vmem>>, vector<8x1xf32>,
      %cst_32 = arith.constant 0.000000e+00 : f32
      %38 = vector.broadcast %cst_32 : f32 to vector<8x1xf32>
      %c0_33 = arith.constant 0 : index
      %c0_34 = arith.constant 0 : index
      %39 = vector.load %arg9[%c0_33, %c0_34] : memref<8x1xf32, #tpu.memory_space<vmem>>, vector<8x1xf32>
      tpu.vector_store %arg9[%c0_33, %c0_34], %38 {strides = array<i32>} : memref<8x1xf32, #tpu.memory_space<vmem>>, vector<8x1xf32>,
      %cst_35 = arith.constant 0.000000e+00 : f32
      %40 = vector.broadcast %cst_35 : f32 to vector<8x8xf32>
      %c0_36 = arith.constant 0 : index
      %c0_37 = arith.constant 0 : index
      %41 = vector.load %arg10[%c0_36, %c0_37] : memref<8x8xf32, #tpu.memory_space<vmem>>, vector<8x8xf32>
      tpu.vector_store %arg10[%c0_36, %c0_37], %40 {strides = array<i32>} : memref<8x8xf32, #tpu.memory_space<vmem>>, vector<8x8xf32>,
    } else {
    }
    %c0 = arith.constant 0 : index
    %c0_1 = arith.constant 0 : index
    %c0_2 = arith.constant 0 : index
    %c0_3 = arith.constant 0 : index
    %3 = vector.load %arg4[%c0, %c0_1, %c0_2, %c0_3] : memref<1x1x8x8xbf16, #tpu.memory_space<vmem>>, vector<1x1x8x8xbf16>
    %4 = vector.shape_cast %3 : vector<1x1x8x8xbf16> to vector<8x8xbf16>
    %c0_4 = arith.constant 0 : index
    %c0_5 = arith.constant 0 : index
    %c0_6 = arith.constant 0 : index
    %c0_7 = arith.constant 0 : index
    %5 = vector.load %arg5[%c0_4, %c0_5, %c0_6, %c0_7] : memref<1x1x8x8xbf16, #tpu.memory_space<vmem>>, vector<1x1x8x8xbf16>
    %6 = vector.shape_cast %5 : vector<1x1x8x8xbf16> to vector<8x8xbf16>
    %cst = arith.constant dense<0.000000e+00> : vector<8x8xf32>
    %7 = tpu.matmul %4, %6, %cst {dimension_numbers = #tpu.dot_dimension_numbers<[1], [1], [0], [0], [0, 0, 1, 0], [], []>} : vector<8x8xbf16>, vector<8x8xbf16>, vector<8x8xf32> -> vector<8x8xf32>
    %c0_8 = arith.constant 0 : index
    %c0_9 = arith.constant 0 : index
    %8 = vector.load %arg8[%c0_8, %c0_9] : memref<8x1xf32, #tpu.memory_space<vmem>>, vector<8x1xf32>
    %cst_10 = arith.constant dense<0xFF800000> : vector<8xf32>
    %9 = vector.multi_reduction <maximumf>, %7, %cst_10 [1] : vector<8x8xf32> to vector<8xf32>
    %10 = vector.shape_cast %9 : vector<8xf32> to vector<8x1xf32>
    %11 = arith.maximumf %8, %10 : vector<8x1xf32>
    %12 = arith.subf %8, %11 : vector<8x1xf32>
    %13 = math.exp %12 : vector<8x1xf32>
    %14 = vector.broadcast %11 : vector<8x1xf32> to vector<8x8xf32>
    %15 = arith.subf %7, %14 : vector<8x8xf32>
    %16 = math.exp %15 : vector<8x8xf32>
    %c0_11 = arith.constant 0 : index
    %c0_12 = arith.constant 0 : index
    %17 = vector.load %arg9[%c0_11, %c0_12] : memref<8x1xf32, #tpu.memory_space<vmem>>, vector<8x1xf32>
    %18 = arith.mulf %13, %17 : vector<8x1xf32>
    %cst_13 = arith.constant dense<0.000000e+00> : vector<8xf32>
    %19 = vector.multi_reduction <add>, %16, %cst_13 [1] : vector<8x8xf32> to vector<8xf32>
    %20 = vector.shape_cast %19 : vector<8xf32> to vector<8x1xf32>
    %21 = arith.addf %18, %20 : vector<8x1xf32>
    %c0_14 = arith.constant 0 : index
    %c0_15 = arith.constant 0 : index
    %22 = vector.load %arg9[%c0_14, %c0_15] : memref<8x1xf32, #tpu.memory_space<vmem>>, vector<8x1xf32>
    tpu.vector_store %arg9[%c0_14, %c0_15], %21 {strides = array<i32>} : memref<8x1xf32, #tpu.memory_space<vmem>>, vector<8x1xf32>,
    %c0_16 = arith.constant 0 : index
    %c0_17 = arith.constant 0 : index
    %23 = vector.load %arg10[%c0_16, %c0_17] : memref<8x8xf32, #tpu.memory_space<vmem>>, vector<8x8xf32>
    %24 = vector.broadcast %13 : vector<8x1xf32> to vector<8x8xf32>
    %25 = arith.mulf %24, %23 : vector<8x8xf32>
    %26 = arith.truncf %16 : vector<8x8xf32> to vector<8x8xbf16>
    %c0_18 = arith.constant 0 : index
    %c0_19 = arith.constant 0 : index
    %c0_20 = arith.constant 0 : index
    %c0_21 = arith.constant 0 : index
    %27 = vector.load %arg6[%c0_18, %c0_19, %c0_20, %c0_21] : memref<1x1x8x8xbf16, #tpu.memory_space<vmem>>, vector<1x1x8x8xbf16>
    %28 = vector.shape_cast %27 : vector<1x1x8x8xbf16> to vector<8x8xbf16>
    %cst_22 = arith.constant dense<0.000000e+00> : vector<8x8xf32>
    %29 = tpu.matmul %26, %28, %cst_22 {dimension_numbers = #tpu.dot_dimension_numbers<[1], [0], [0], [1], [0, 0, 1, 1], [], []>} : vector<8x8xbf16>, vector<8x8xbf16>, vector<8x8xf32> -> vector<8x8xf32>
    %30 = arith.addf %25, %29 : vector<8x8xf32>
    %c0_23 = arith.constant 0 : index
    %c0_24 = arith.constant 0 : index
    %31 = vector.load %arg10[%c0_23, %c0_24] : memref<8x8xf32, #tpu.memory_space<vmem>>, vector<8x8xf32>
    tpu.vector_store %arg10[%c0_23, %c0_24], %30 {strides = array<i32>} : memref<8x8xf32, #tpu.memory_space<vmem>>, vector<8x8xf32>,
    %c0_25 = arith.constant 0 : index
    %c0_26 = arith.constant 0 : index
    %32 = vector.load %arg8[%c0_25, %c0_26] : memref<8x1xf32, #tpu.memory_space<vmem>>, vector<8x1xf32>
    tpu.vector_store %arg8[%c0_25, %c0_26], %11 {strides = array<i32>} : memref<8x1xf32, #tpu.memory_space<vmem>>, vector<8x1xf32>,
    %c0_i32_27 = arith.constant 0 : i32
    %33 = arith.cmpi eq, %arg3, %c0_i32_27 : i32
    %34 = arith.extui %33 : i1 to i32
    %c0_i32_28 = arith.constant 0 : i32
    %35 = arith.cmpi ne, %34, %c0_i32_28 : i32
    scf.if %35 {
      %c0_29 = arith.constant 0 : index
      %c0_30 = arith.constant 0 : index
      %36 = vector.load %arg9[%c0_29, %c0_30] : memref<8x1xf32, #tpu.memory_space<vmem>>, vector<8x1xf32>
      %37 = tpu.reciprocal %36 {approx = true} : vector<8x1xf32> -> vector<8x1xf32>
      %c0_31 = arith.constant 0 : index
      %c0_32 = arith.constant 0 : index
      %38 = vector.load %arg10[%c0_31, %c0_32] : memref<8x8xf32, #tpu.memory_space<vmem>>, vector<8x8xf32>
      %39 = vector.broadcast %37 : vector<8x1xf32> to vector<8x8xf32>
      %40 = arith.mulf %38, %39 : vector<8x8xf32>
      %41 = arith.truncf %40 : vector<8x8xf32> to vector<8x8xbf16>
      %c0_33 = arith.constant 0 : index
      %c0_34 = arith.constant 0 : index
      %c0_35 = arith.constant 0 : index
      %c0_36 = arith.constant 0 : index
      %42 = vector.load %arg7[%c0_33, %c0_34, %c0_35, %c0_36] : memref<1x1x8x8xbf16, #tpu.memory_space<vmem>>, vector<1x1x8x8xbf16>
      %43 = vector.shape_cast %42 : vector<1x1x8x8xbf16> to vector<8x8xbf16>
      %44 = vector.shape_cast %41 : vector<8x8xbf16> to vector<1x1x8x8xbf16>
      tpu.vector_store %arg7[%c0_33, %c0_34, %c0_35, %c0_36], %44 {strides = array<i32>} : memref<1x1x8x8xbf16, #tpu.memory_space<vmem>>, vector<1x1x8x8xbf16>,
    } else {
    }
    return
  }
  func.func @transform_0(%arg0: i32, %arg1: i32, %arg2: i32, %arg3: i32) -> (i32, i32, i32, i32) {
    %c0_i32 = arith.constant 0 : i32
    %c0_i32_0 = arith.constant 0 : i32
    return %arg0, %arg1, %arg2, %c0_i32 : i32, i32, i32, i32
  }
  func.func @transform_1(%arg0: i32, %arg1: i32, %arg2: i32, %arg3: i32) -> (i32, i32, i32, i32) {
    %c0_i32 = arith.constant 0 : i32
    %c0_i32_0 = arith.constant 0 : i32
    return %arg0, %arg1, %arg3, %c0_i32 : i32, i32, i32, i32
  }
  func.func @transform_2(%arg0: i32, %arg1: i32, %arg2: i32, %arg3: i32) -> (i32, i32, i32, i32) {
    %c0_i32 = arith.constant 0 : i32
    %c0_i32_0 = arith.constant 0 : i32
    return %arg0, %arg1, %arg3, %c0_i32 : i32, i32, i32, i32
  }
  func.func @transform_3(%arg0: i32, %arg1: i32, %arg2: i32, %arg3: i32) -> (i32, i32, i32, i32) {
    %c0_i32 = arith.constant 0 : i32
    %c0_i32_0 = arith.constant 0 : i32
    return %arg0, %arg1, %arg2, %c0_i32 : i32, i32, i32, i32
  }
}

module attributes {stable_mosaic.version = 11 : i64} {
  func.func @_linear_kernel(%arg0: i32, %arg1: i32, %arg2: i32, %arg3: memref<16x32xbf16, #tpu.memory_space<vmem>>, %arg4: memref<32x64xbf16, #tpu.memory_space<vmem>>, %arg5: memref<1x64xf32, #tpu.memory_space<vmem>>, %arg6: memref<16x64xbf16, #tpu.memory_space<vmem>>, %arg7: memref<16x64xf32, #tpu.memory_space<vmem>>) attributes {dimension_semantics = [#tpu.dimension_semantics<parallel>, #tpu.dimension_semantics<parallel>, #tpu.dimension_semantics<arbitrary>], iteration_bounds = array<i64: 1, 1, 1>, scalar_prefetch = 0 : i64, scratch_operands = 1 : i64, tpu.core_type = #tpu.core_type<tc>, window_params = [{transform_indices = @transform_0, window_bounds = array<i64: 16, 32>}, {transform_indices = @transform_1, window_bounds = array<i64: 32, 64>}, {transform_indices = @transform_2, window_bounds = array<i64: 1, 64>}, {transform_indices = @transform_3, window_bounds = array<i64: 16, 64>}]} {
    %c0_i32 = arith.constant 0 : i32
    %0 = arith.cmpi eq, %arg2, %c0_i32 : i32
    %1 = arith.extui %0 : i1 to i32
    %c0_i32_0 = arith.constant 0 : i32
    %2 = arith.cmpi ne, %1, %c0_i32_0 : i32
    scf.if %2 {
      %cst_10 = arith.constant 0.000000e+00 : f32
      %12 = vector.broadcast %cst_10 : f32 to vector<16x64xf32>
      %c0_11 = arith.constant 0 : index
      %c0_12 = arith.constant 0 : index
      %13 = vector.load %arg7[%c0_11, %c0_12] : memref<16x64xf32, #tpu.memory_space<vmem>>, vector<16x64xf32>
      tpu.vector_store %arg7[%c0_11, %c0_12], %12 {strides = array<i32>} : memref<16x64xf32, #tpu.memory_space<vmem>>, vector<16x64xf32>,
    } else {
    }
    %c0 = arith.constant 0 : index
    %c0_1 = arith.constant 0 : index
    %3 = vector.load %arg7[%c0, %c0_1] : memref<16x64xf32, #tpu.memory_space<vmem>>, vector<16x64xf32>
    %c0_2 = arith.constant 0 : index
    %c0_3 = arith.constant 0 : index
    %4 = vector.load %arg3[%c0_2, %c0_3] : memref<16x32xbf16, #tpu.memory_space<vmem>>, vector<16x32xbf16>
    %c0_4 = arith.constant 0 : index
    %c0_5 = arith.constant 0 : index
    %5 = vector.load %arg4[%c0_4, %c0_5] : memref<32x64xbf16, #tpu.memory_space<vmem>>, vector<32x64xbf16>
    %cst = arith.constant dense<0.000000e+00> : vector<16x64xf32>
    %6 = tpu.matmul %4, %5, %cst {dimension_numbers = #tpu.dot_dimension_numbers<[1], [0], [0], [1], [0, 0, 1, 1], [], []>} : vector<16x32xbf16>, vector<32x64xbf16>, vector<16x64xf32> -> vector<16x64xf32>
    %7 = arith.addf %3, %6 : vector<16x64xf32>
    %c0_6 = arith.constant 0 : index
    %c0_7 = arith.constant 0 : index
    %8 = vector.load %arg7[%c0_6, %c0_7] : memref<16x64xf32, #tpu.memory_space<vmem>>, vector<16x64xf32>
    tpu.vector_store %arg7[%c0_6, %c0_7], %7 {strides = array<i32>} : memref<16x64xf32, #tpu.memory_space<vmem>>, vector<16x64xf32>,
    %c0_i32_8 = arith.constant 0 : i32
    %9 = arith.cmpi eq, %arg2, %c0_i32_8 : i32
    %10 = arith.extui %9 : i1 to i32
    %c0_i32_9 = arith.constant 0 : i32
    %11 = arith.cmpi ne, %10, %c0_i32_9 : i32
    scf.if %11 {
      %c0_10 = arith.constant 0 : index
      %c0_11 = arith.constant 0 : index
      %12 = vector.load %arg7[%c0_10, %c0_11] : memref<16x64xf32, #tpu.memory_space<vmem>>, vector<16x64xf32>
      %c0_12 = arith.constant 0 : index
      %c0_13 = arith.constant 0 : index
      %13 = vector.load %arg5[%c0_12, %c0_13] : memref<1x64xf32, #tpu.memory_space<vmem>>, vector<1x64xf32>
      %14 = vector.broadcast %13 : vector<1x64xf32> to vector<16x64xf32>
      %15 = arith.addf %12, %14 : vector<16x64xf32>
      %cst_14 = arith.constant 0.000000e+00 : f32
      %16 = vector.broadcast %cst_14 : f32 to vector<16x64xf32>
      %17 = arith.maximumf %15, %16 : vector<16x64xf32>
      %18 = arith.truncf %17 : vector<16x64xf32> to vector<16x64xbf16>
      %c0_15 = arith.constant 0 : index
      %c0_16 = arith.constant 0 : index
      %19 = vector.load %arg6[%c0_15, %c0_16] : memref<16x64xbf16, #tpu.memory_space<vmem>>, vector<16x64xbf16>
      tpu.vector_store %arg6[%c0_15, %c0_16], %18 {strides = array<i32>} : memref<16x64xbf16, #tpu.memory_space<vmem>>, vector<16x64xbf16>,
    } else {
    }
    return
  }
  func.func @transform_0(%arg0: i32, %arg1: i32, %arg2: i32) -> (i32, i32) {
    %c0_i32 = arith.constant 0 : i32
    return %arg0, %arg2 : i32, i32
  }
  func.func @transform_1(%arg0: i32, %arg1: i32, %arg2: i32) -> (i32, i32) {
    %c0_i32 = arith.constant 0 : i32
    return %arg2, %arg1 : i32, i32
  }
  func.func @transform_2(%arg0: i32, %arg1: i32, %arg2: i32) -> (i32, i32) {
    %c0_i32 = arith.constant 0 : i32
    %c0_i32_0 = arith.constant 0 : i32
    return %c0_i32, %arg1 : i32, i32
  }
  func.func @transform_3(%arg0: i32, %arg1: i32, %arg2: i32) -> (i32, i32) {
    %c0_i32 = arith.constant 0 : i32
    return %arg0, %arg1 : i32, i32
  }
}

module attributes {stable_mosaic.version = 11 : i64} {
  func.func @_linear_add_ln_kernel(%arg0: i32, %arg1: i32, %arg2: memref<16x64xbf16, #tpu.memory_space<vmem>>, %arg3: memref<64x32xbf16, #tpu.memory_space<vmem>>, %arg4: memref<1x32xf32, #tpu.memory_space<vmem>>, %arg5: memref<16x32xbf16, #tpu.memory_space<vmem>>, %arg6: memref<1x32xf32, #tpu.memory_space<vmem>>, %arg7: memref<1x32xf32, #tpu.memory_space<vmem>>, %arg8: memref<16x32xbf16, #tpu.memory_space<vmem>>, %arg9: memref<16x32xf32, #tpu.memory_space<vmem>>) attributes {dimension_semantics = [#tpu.dimension_semantics<parallel>, #tpu.dimension_semantics<arbitrary>], iteration_bounds = array<i64: 1, 1>, scalar_prefetch = 0 : i64, scratch_operands = 1 : i64, tpu.core_type = #tpu.core_type<tc>, window_params = [{transform_indices = @transform_0, window_bounds = array<i64: 16, 64>}, {transform_indices = @transform_1, window_bounds = array<i64: 64, 32>}, {pipeline_mode = #tpu.pipeline_mode<synchronous>, transform_indices = @transform_2, window_bounds = array<i64: 1, 32>}, {transform_indices = @transform_3, window_bounds = array<i64: 16, 32>}, {pipeline_mode = #tpu.pipeline_mode<synchronous>, transform_indices = @transform_4, window_bounds = array<i64: 1, 32>}, {pipeline_mode = #tpu.pipeline_mode<synchronous>, transform_indices = @transform_5, window_bounds = array<i64: 1, 32>}, {transform_indices = @transform_6, window_bounds = array<i64: 16, 32>}]} {
    %c0_i32 = arith.constant 0 : i32
    %0 = arith.cmpi eq, %arg1, %c0_i32 : i32
    %1 = arith.extui %0 : i1 to i32
    %c0_i32_0 = arith.constant 0 : i32
    %2 = arith.cmpi ne, %1, %c0_i32_0 : i32
    scf.if %2 {
      %cst_10 = arith.constant 0.000000e+00 : f32
      %12 = vector.broadcast %cst_10 : f32 to vector<16x32xf32>
      %c0_11 = arith.constant 0 : index
      %c0_12 = arith.constant 0 : index
      %13 = vector.load %arg9[%c0_11, %c0_12] : memref<16x32xf32, #tpu.memory_space<vmem>>, vector<16x32xf32>
      tpu.vector_store %arg9[%c0_11, %c0_12], %12 {strides = array<i32>} : memref<16x32xf32, #tpu.memory_space<vmem>>, vector<16x32xf32>,
    } else {
    }
    %c0 = arith.constant 0 : index
    %c0_1 = arith.constant 0 : index
    %3 = vector.load %arg9[%c0, %c0_1] : memref<16x32xf32, #tpu.memory_space<vmem>>, vector<16x32xf32>
    %c0_2 = arith.constant 0 : index
    %c0_3 = arith.constant 0 : index
    %4 = vector.load %arg2[%c0_2, %c0_3] : memref<16x64xbf16, #tpu.memory_space<vmem>>, vector<16x64xbf16>
    %c0_4 = arith.constant 0 : index
    %c0_5 = arith.constant 0 : index
    %5 = vector.load %arg3[%c0_4, %c0_5] : memref<64x32xbf16, #tpu.memory_space<vmem>>, vector<64x32xbf16>
    %cst = arith.constant dense<0.000000e+00> : vector<16x32xf32>
    %6 = tpu.matmul %4, %5, %cst {dimension_numbers = #tpu.dot_dimension_numbers<[1], [0], [0], [1], [0, 0, 1, 1], [], []>} : vector<16x64xbf16>, vector<64x32xbf16>, vector<16x32xf32> -> vector<16x32xf32>
    %7 = arith.addf %3, %6 : vector<16x32xf32>
    %c0_6 = arith.constant 0 : index
    %c0_7 = arith.constant 0 : index
    %8 = vector.load %arg9[%c0_6, %c0_7] : memref<16x32xf32, #tpu.memory_space<vmem>>, vector<16x32xf32>
    tpu.vector_store %arg9[%c0_6, %c0_7], %7 {strides = array<i32>} : memref<16x32xf32, #tpu.memory_space<vmem>>, vector<16x32xf32>,
    %c0_i32_8 = arith.constant 0 : i32
    %9 = arith.cmpi eq, %arg1, %c0_i32_8 : i32
    %10 = arith.extui %9 : i1 to i32
    %c0_i32_9 = arith.constant 0 : i32
    %11 = arith.cmpi ne, %10, %c0_i32_9 : i32
    scf.if %11 {
      %c0_10 = arith.constant 0 : index
      %c0_11 = arith.constant 0 : index
      %12 = vector.load %arg9[%c0_10, %c0_11] : memref<16x32xf32, #tpu.memory_space<vmem>>, vector<16x32xf32>
      %c0_12 = arith.constant 0 : index
      %c0_13 = arith.constant 0 : index
      %13 = vector.load %arg4[%c0_12, %c0_13] : memref<1x32xf32, #tpu.memory_space<vmem>>, vector<1x32xf32>
      %14 = vector.broadcast %13 : vector<1x32xf32> to vector<16x32xf32>
      %15 = arith.addf %12, %14 : vector<16x32xf32>
      %c0_14 = arith.constant 0 : index
      %c0_15 = arith.constant 0 : index
      %16 = vector.load %arg5[%c0_14, %c0_15] : memref<16x32xbf16, #tpu.memory_space<vmem>>, vector<16x32xbf16>
      %17 = arith.extf %16 : vector<16x32xbf16> to vector<16x32xf32>
      %18 = arith.addf %15, %17 : vector<16x32xf32>
      %cst_16 = arith.constant dense<0.000000e+00> : vector<16xf32>
      %19 = vector.multi_reduction <add>, %18, %cst_16 [1] : vector<16x32xf32> to vector<16xf32>
      %20 = vector.shape_cast %19 : vector<16xf32> to vector<16x1xf32>
      %cst_17 = arith.constant 3.125000e-02 : f32
      %21 = vector.broadcast %cst_17 : f32 to vector<16x1xf32>
      %22 = arith.mulf %20, %21 : vector<16x1xf32>
      %23 = arith.mulf %18, %18 : vector<16x32xf32>
      %cst_18 = arith.constant dense<0.000000e+00> : vector<16xf32>
      %24 = vector.multi_reduction <add>, %23, %cst_18 [1] : vector<16x32xf32> to vector<16xf32>
      %25 = vector.shape_cast %24 : vector<16xf32> to vector<16x1xf32>
      %cst_19 = arith.constant 3.125000e-02 : f32
      %26 = vector.broadcast %cst_19 : f32 to vector<16x1xf32>
      %27 = arith.mulf %25, %26 : vector<16x1xf32>
      %28 = arith.mulf %22, %22 : vector<16x1xf32>
      %29 = arith.subf %27, %28 : vector<16x1xf32>
      %30 = vector.broadcast %22 : vector<16x1xf32> to vector<16x32xf32>
      %31 = arith.subf %18, %30 : vector<16x32xf32>
      %cst_20 = arith.constant 9.99999974E-6 : f32
      %32 = vector.broadcast %cst_20 : f32 to vector<16x1xf32>
      %33 = arith.addf %29, %32 : vector<16x1xf32>
      %34 = math.rsqrt %33 : vector<16x1xf32>
      %35 = vector.broadcast %34 : vector<16x1xf32> to vector<16x32xf32>
      %36 = arith.mulf %31, %35 : vector<16x32xf32>
      %c0_21 = arith.constant 0 : index
      %c0_22 = arith.constant 0 : index
      %37 = vector.load %arg6[%c0_21, %c0_22] : memref<1x32xf32, #tpu.memory_space<vmem>>, vector<1x32xf32>
      %38 = vector.broadcast %37 : vector<1x32xf32> to vector<16x32xf32>
      %39 = arith.mulf %36, %38 : vector<16x32xf32>
      %c0_23 = arith.constant 0 : index
      %c0_24 = arith.constant 0 : index
      %40 = vector.load %arg7[%c0_23, %c0_24] : memref<1x32xf32, #tpu.memory_space<vmem>>, vector<1x32xf32>
      %41 = vector.broadcast %40 : vector<1x32xf32> to vector<16x32xf32>
      %42 = arith.addf %39, %41 : vector<16x32xf32>
      %43 = arith.truncf %42 : vector<16x32xf32> to vector<16x32xbf16>
      %c0_25 = arith.constant 0 : index
      %c0_26 = arith.constant 0 : index
      %44 = vector.load %arg8[%c0_25, %c0_26] : memref<16x32xbf16, #tpu.memory_space<vmem>>, vector<16x32xbf16>
      tpu.vector_store %arg8[%c0_25, %c0_26], %43 {strides = array<i32>} : memref<16x32xbf16, #tpu.memory_space<vmem>>, vector<16x32xbf16>,
    } else {
    }
    return
  }
  func.func @transform_0(%arg0: i32, %arg1: i32) -> (i32, i32) {
    %c0_i32 = arith.constant 0 : i32
    return %arg0, %arg1 : i32, i32
  }
  func.func @transform_1(%arg0: i32, %arg1: i32) -> (i32, i32) {
    %c0_i32 = arith.constant 0 : i32
    %c0_i32_0 = arith.constant 0 : i32
    return %arg1, %c0_i32 : i32, i32
  }
  func.func @transform_2(%arg0: i32, %arg1: i32) -> (i32, i32) {
    %c0_i32 = arith.constant 0 : i32
    %c0_i32_0 = arith.constant 0 : i32
    %c0_i32_1 = arith.constant 0 : i32
    return %c0_i32, %c0_i32_0 : i32, i32
  }
  func.func @transform_3(%arg0: i32, %arg1: i32) -> (i32, i32) {
    %c0_i32 = arith.constant 0 : i32
    %c0_i32_0 = arith.constant 0 : i32
    return %arg0, %c0_i32 : i32, i32
  }
  func.func @transform_4(%arg0: i32, %arg1: i32) -> (i32, i32) {
    %c0_i32 = arith.constant 0 : i32
    %c0_i32_0 = arith.constant 0 : i32
    %c0_i32_1 = arith.constant 0 : i32
    return %c0_i32, %c0_i32_0 : i32, i32
  }
  func.func @transform_5(%arg0: i32, %arg1: i32) -> (i32, i32) {
    %c0_i32 = arith.constant 0 : i32
    %c0_i32_0 = arith.constant 0 : i32
    %c0_i32_1 = arith.constant 0 : i32
    return %c0_i32, %c0_i32_0 : i32, i32
  }
  func.func @transform_6(%arg0: i32, %arg1: i32) -> (i32, i32) {
    %c0_i32 = arith.constant 0 : i32
    %c0_i32_0 = arith.constant 0 : i32
    return %arg0, %c0_i32 : i32, i32
  }
}

module attributes {stable_mosaic.version = 11 : i64} {
  func.func @_linear_kernel(%arg0: i32, %arg1: i32, %arg2: i32, %arg3: memref<16x32xbf16, #tpu.memory_space<vmem>>, %arg4: memref<32x32xbf16, #tpu.memory_space<vmem>>, %arg5: memref<1x32xf32, #tpu.memory_space<vmem>>, %arg6: memref<16x32xf32, #tpu.memory_space<vmem>>, %arg7: memref<16x32xf32, #tpu.memory_space<vmem>>) attributes {dimension_semantics = [#tpu.dimension_semantics<parallel>, #tpu.dimension_semantics<parallel>, #tpu.dimension_semantics<arbitrary>], iteration_bounds = array<i64: 1, 1, 1>, scalar_prefetch = 0 : i64, scratch_operands = 1 : i64, tpu.core_type = #tpu.core_type<tc>, window_params = [{transform_indices = @transform_0, window_bounds = array<i64: 16, 32>}, {transform_indices = @transform_1, window_bounds = array<i64: 32, 32>}, {transform_indices = @transform_2, window_bounds = array<i64: 1, 32>}, {transform_indices = @transform_3, window_bounds = array<i64: 16, 32>}]} {
    %c0_i32 = arith.constant 0 : i32
    %0 = arith.cmpi eq, %arg2, %c0_i32 : i32
    %1 = arith.extui %0 : i1 to i32
    %c0_i32_0 = arith.constant 0 : i32
    %2 = arith.cmpi ne, %1, %c0_i32_0 : i32
    scf.if %2 {
      %cst_10 = arith.constant 0.000000e+00 : f32
      %12 = vector.broadcast %cst_10 : f32 to vector<16x32xf32>
      %c0_11 = arith.constant 0 : index
      %c0_12 = arith.constant 0 : index
      %13 = vector.load %arg7[%c0_11, %c0_12] : memref<16x32xf32, #tpu.memory_space<vmem>>, vector<16x32xf32>
      tpu.vector_store %arg7[%c0_11, %c0_12], %12 {strides = array<i32>} : memref<16x32xf32, #tpu.memory_space<vmem>>, vector<16x32xf32>,
    } else {
    }
    %c0 = arith.constant 0 : index
    %c0_1 = arith.constant 0 : index
    %3 = vector.load %arg7[%c0, %c0_1] : memref<16x32xf32, #tpu.memory_space<vmem>>, vector<16x32xf32>
    %c0_2 = arith.constant 0 : index
    %c0_3 = arith.constant 0 : index
    %4 = vector.load %arg3[%c0_2, %c0_3] : memref<16x32xbf16, #tpu.memory_space<vmem>>, vector<16x32xbf16>
    %c0_4 = arith.constant 0 : index
    %c0_5 = arith.constant 0 : index
    %5 = vector.load %arg4[%c0_4, %c0_5] : memref<32x32xbf16, #tpu.memory_space<vmem>>, vector<32x32xbf16>
    %cst = arith.constant dense<0.000000e+00> : vector<16x32xf32>
    %6 = tpu.matmul %4, %5, %cst {dimension_numbers = #tpu.dot_dimension_numbers<[1], [0], [0], [1], [0, 0, 1, 1], [], []>} : vector<16x32xbf16>, vector<32x32xbf16>, vector<16x32xf32> -> vector<16x32xf32>
    %7 = arith.addf %3, %6 : vector<16x32xf32>
    %c0_6 = arith.constant 0 : index
    %c0_7 = arith.constant 0 : index
    %8 = vector.load %arg7[%c0_6, %c0_7] : memref<16x32xf32, #tpu.memory_space<vmem>>, vector<16x32xf32>
    tpu.vector_store %arg7[%c0_6, %c0_7], %7 {strides = array<i32>} : memref<16x32xf32, #tpu.memory_space<vmem>>, vector<16x32xf32>,
    %c0_i32_8 = arith.constant 0 : i32
    %9 = arith.cmpi eq, %arg2, %c0_i32_8 : i32
    %10 = arith.extui %9 : i1 to i32
    %c0_i32_9 = arith.constant 0 : i32
    %11 = arith.cmpi ne, %10, %c0_i32_9 : i32
    scf.if %11 {
      %c0_10 = arith.constant 0 : index
      %c0_11 = arith.constant 0 : index
      %12 = vector.load %arg7[%c0_10, %c0_11] : memref<16x32xf32, #tpu.memory_space<vmem>>, vector<16x32xf32>
      %c0_12 = arith.constant 0 : index
      %c0_13 = arith.constant 0 : index
      %13 = vector.load %arg5[%c0_12, %c0_13] : memref<1x32xf32, #tpu.memory_space<vmem>>, vector<1x32xf32>
      %14 = vector.broadcast %13 : vector<1x32xf32> to vector<16x32xf32>
      %15 = arith.addf %12, %14 : vector<16x32xf32>
      %c0_14 = arith.constant 0 : index
      %c0_15 = arith.constant 0 : index
      %16 = vector.load %arg6[%c0_14, %c0_15] : memref<16x32xf32, #tpu.memory_space<vmem>>, vector<16x32xf32>
      tpu.vector_store %arg6[%c0_14, %c0_15], %15 {strides = array<i32>} : memref<16x32xf32, #tpu.memory_space<vmem>>, vector<16x32xf32>,
    } else {
    }
    return
  }
  func.func @transform_0(%arg0: i32, %arg1: i32, %arg2: i32) -> (i32, i32) {
    %c0_i32 = arith.constant 0 : i32
    return %arg0, %arg2 : i32, i32
  }
  func.func @transform_1(%arg0: i32, %arg1: i32, %arg2: i32) -> (i32, i32) {
    %c0_i32 = arith.constant 0 : i32
    return %arg2, %arg1 : i32, i32
  }
  func.func @transform_2(%arg0: i32, %arg1: i32, %arg2: i32) -> (i32, i32) {
    %c0_i32 = arith.constant 0 : i32
    %c0_i32_0 = arith.constant 0 : i32
    return %c0_i32, %arg1 : i32, i32
  }
  func.func @transform_3(%arg0: i32, %arg1: i32, %arg2: i32) -> (i32, i32) {
    %c0_i32 = arith.constant 0 : i32
    return %arg0, %arg1 : i32, i32
  }
}

</mosaic_0001>

<bundles_post_ra>
// kernel: transformer_decoder.19
= control target key start
LH: loop header
LB: loop body
LE: loop exit
PB: predicated region body
PF: predicated region fallthrough
CT: control target
= control target key end

     0   :  { %vm19_vm0 = vcmask 785408   ;;  %v151_v0 = vmov 0.0   ;;  %vm152_vm1 = vmmov 0   ;;  %vm47_vm2 = vcmask 261120   ;;  %s195_s1 = inlined_call_operand.vmem [shape: bf16[32,96], index: 1, kind: input, shape index: {}]   ;;  %s196_s0 = inlined_call_operand.vmem [shape: bf16[16,32], index: 0, kind: input, shape index: {}]   ;;  %s197_s2 = inlined_call_operand.vmem [shape: f32[1,96], index: 2, kind: input, shape index: {}]   ;;  %s198_s3 = inlined_call_operand.vmem [shape: bf16[16,96], index: 3, kind: output, shape index: {}]  }
   0x1   :  { %138 = vmatprep.subr.bf16.mxu0 %v151_v0  ;;  %v148_v1 = vld [vmem:[%s195_s1] sm:$0xff]   ;;  %142 = vmatprep.mubr.msk.bf16.mxu0 %vm152_vm1, %v151_v0  ;;  %20 = vst.msk [vmem:[#allocation2] sm:$0xff] %vm19_vm0, %v151_v0  ;;  %21 = vst.msk [vmem:[#allocation2 + $0x8] sm:$0xff] %vm19_vm0, %v151_v0  ;;  %v149_v2 = vld [vmem:[%s195_s1 + $0x8] sm:$0xff]   ;;  %vm119_vm3 = vcmask 781312  }
   0x2   :  { %139 = vmatpush3.bf16.msra.mxu0 %v148_v1  ;;  %v150_v3 = vld [vmem:[%s196_s0] sm:$0xff]  }
   0x3   :  { %140 = vmatprep.subr.bf16.mxu0 %v151_v0  ;;  %v130_v12 = vld [vmem:[%s197_s2] ss:$0 sm:$0xff] }
   0x6   :  { %141 = vmatpush3.bf16.msra.mxu0 %v149_v2 }
   0x8   :  { %v22_v4 = vld [vmem:[#allocation2] sm:$0xff]  ;;  %v23_v6 = vld [vmem:[#allocation2 + $0x8] sm:$0xff] }
   0x9   :  { %143 = vmatmul.mubr.msk.bf16.vlgmr.msra.gmra.mrb[0].mxu0 %vm47_vm2, %v150_v3 }
  0xdc   :  { %v85_v5 = vpop.f32.mrb[0].mxu0 }
  0xdd   :  { %v92_v7 = vadd.f32 %v85_v5, %v22_v4  ;;  %v144_v8 = vpop.f32.mrb[1].mxu0 }
  0xde   :  { %v88_v9 = vpop.f32.mrb[2].mxu0 }
  0xdf   :  { %95 = vst.msk [vmem:[#allocation2] sm:$0xff] %vm19_vm0, %v92_v7  ;;  %v93_v10 = vadd.f32 %v88_v9, %v23_v6  ;;  %v145_v11 = vpop.f32.mrb[3].mxu0 }
  0xe1   :  { %96 = vst.msk [vmem:[#allocation2 + $0x8] sm:$0xff] %vm19_vm0, %v93_v10 }
  0xe6   :  { %v100_v13 = vld [vmem:[#allocation2] sm:$0xff] }
  0xe7   :  { %v109_v14 = vadd.f32 %v130_v12, %v100_v13 }
  0xe8   :  { %v101_v15 = vld [vmem:[#allocation2 + $0x8] sm:$0xff] }
  0xe9   :  { %v133_v16 = vpack.c.bf16 %v109_v14, %v109_v14  ;;  %v110_v17 = vadd.f32 %v130_v12, %v101_v15 }
  0xeb   :  { %120 = vst.msk [vmem:[%s198_s3] sm:$0xf] %vm119_vm3, %v133_v16  ;;  %v134_v18 = vpack.c.bf16 %v110_v17, %v110_v17 }
  0xed   :  { %121 = vst.msk [vmem:[%s198_s3 + $0x4] sm:$0xf] %vm119_vm3, %v134_v18 }

// kernel: transformer_decoder.21
= control target key start
LH: loop header
LB: loop body
LE: loop exit
PB: predicated region body
PF: predicated region fallthrough
CT: control target
= control target key end

     0   :  { %vm28_vm0 = vcmask 261120   ;;  %v223_v0 = vmov 0.0   ;;  %vm224_vm1 = vmmov 0   ;;  %vm181_vm2 = vcmask 257024   ;;  %s296_s1 = inlined_call_operand.vmem [shape: bf16[32,32], index: 1, kind: input, shape index: {}]   ;;  %s297_s0 = inlined_call_operand.vmem [shape: bf16[16,32], index: 0, kind: input, shape index: {}]   ;;  %s298_s3 = inlined_call_operand.vmem [shape: bf16[16,32], index: 3, kind: input, shape index: {}]   ;;  %s299_s2 = inlined_call_operand.vmem [shape: f32[1,32], index: 2, kind: input, shape index: {}]   ;;  %s300_s4 = inlined_call_operand.vmem [shape: f32[1,32], index: 4, kind: input, shape index: {}]   ;;  %s301_s5 = inlined_call_operand.vmem [shape: f32[1,32], index: 5, kind: input, shape index: {}]   ;;  %s302_s6 = inlined_call_operand.vmem [shape: bf16[16,32], index: 6, kind: output, shape index: {}]  }
   0x1   :  { %206 = vmatprep.subr.bf16.mxu0 %v223_v0  ;;  %v216_v1 = vld [vmem:[%s296_s1] sm:$0xff]   ;;  %210 = vmatprep.mubr.msk.bf16.mxu0 %vm224_vm1, %v223_v0  ;;  %29 = vst.msk [vmem:[#allocation2] sm:$0xff] %vm28_vm0, %v223_v0  ;;  %30 = vst.msk [vmem:[#allocation2 + $0x8] sm:$0xff] %vm28_vm0, %v223_v0  ;;  %v217_v2 = vld [vmem:[%s296_s1 + $0x8] sm:$0xff]  }
   0x2   :  { %207 = vmatpush3.bf16.msra.mxu0 %v216_v1  ;;  %v218_v3 = vld [vmem:[%s297_s0] sm:$0xff]  }
   0x3   :  { %208 = vmatprep.subr.bf16.mxu0 %v223_v0  ;;  %v200_v12 = vld [vmem:[%s298_s3] sm:$0xff]  }
   0x4   :  { %v192_v13 = vld [vmem:[%s299_s2] ss:$0 sm:$0xff]  ;;  %v201_v14 = vunpack.c.l.bf16 %v200_v12  ;;  %v202_v17 = vunpack.c.h.bf16 %v200_v12 }
   0x5   :  { %v193_v44 = vld [vmem:[%s300_s4] ss:$0 sm:$0xff] }
   0x6   :  { %209 = vmatpush3.bf16.msra.mxu0 %v217_v2  ;;  %v194_v46 = vld [vmem:[%s301_s5] ss:$0 sm:$0xff] }
   0x8   :  { %v31_v4 = vld [vmem:[#allocation2] sm:$0xff]  ;;  %v32_v6 = vld [vmem:[#allocation2 + $0x8] sm:$0xff] }
   0x9   :  { %211 = vmatmul.mubr.msk.bf16.vlgmr.msra.gmra.mrb[0].mxu0 %vm28_vm0, %v218_v3 }
  0xdc   :  { %v94_v5 = vpop.f32.mrb[0].mxu0 }
  0xdd   :  { %v101_v7 = vadd.f32 %v94_v5, %v31_v4  ;;  %v212_v8 = vpop.f32.mrb[1].mxu0 }
  0xde   :  { %v97_v9 = vpop.f32.mrb[2].mxu0 }
  0xdf   :  { %103 = vst.msk [vmem:[#allocation2] sm:$0xff] %vm28_vm0, %v101_v7  ;;  %v102_v10 = vadd.f32 %v97_v9, %v32_v6  ;;  %v213_v11 = vpop.f32.mrb[3].mxu0 }
  0xe1   :  { %104 = vst.msk [vmem:[#allocation2 + $0x8] sm:$0xff] %vm28_vm0, %v102_v10 }
  0xe6   :  { %v108_v15 = vld [vmem:[#allocation2] sm:$0xff] }
  0xe7   :  { %v117_v16 = vadd.f32 %v192_v13, %v108_v15 }
  0xe8   :  { %v109_v18 = vld [vmem:[#allocation2 + $0x8] sm:$0xff] }
  0xe9   :  { %v123_v19 = vadd.f32 %v201_v14, %v117_v16  ;;  %v118_v20 = vadd.f32 %v192_v13, %v109_v18 }
  0xeb   :  { %v125_v21 = vsel %vm28_vm0, %v123_v19, 0.0  ;;  %v133_v22 = vmul.f32 %v123_v19, %v123_v19  ;;  %v124_v23 = vadd.f32 %v202_v17, %v118_v20 }
  0xec   :  { %126 = vadd.xlane.f32.xlu0 %v125_v21 }
  0xed   :  { %v135_v24 = vsel %vm28_vm0, %v133_v22, 0.0  ;;  %v134_v25 = vmul.f32 %v124_v23, %v124_v23  ;;  %v128_v26 = vsel %vm28_vm0, %v124_v23, 0.0 }
  0xee   :  { %136 = vadd.xlane.f32.xlu1 %v135_v24 }
  0xef   :  { %v138_v27 = vsel %vm28_vm0, %v134_v25, 0.0 }
  0xf0   :  { %129 = vadd.xlane.f32.xlu0 %v128_v26 }
  0xf2   :  { %139 = vadd.xlane.f32.xlu1 %v138_v27 }
 0x179   :  { %v127_v28 = vpop.xlane.xlu0 %126 }
 0x17a   :  { %v131_v29 = vmul.f32 0.03125, %v127_v28 }
 0x17b   :  { %v137_v30 = vpop.xlane.xlu1 %136 }
 0x17c   :  { %v143_v31 = vmul.f32 %v131_v29, %v131_v29  ;;  %v141_v32 = vmul.f32 0.03125, %v137_v30  ;;  %v147_v42 = vsub.f32 %v123_v19, %v131_v29 }
 0x17d   :  { %v130_v33 = vpop.xlane.xlu0 %129 }
 0x17e   :  { %v145_v34 = vsub.f32 %v141_v32, %v143_v31  ;;  %v132_v35 = vmul.f32 0.03125, %v130_v33 }
 0x17f   :  { %v140_v36 = vpop.xlane.xlu1 %139 }
 0x180   :  { %v149_v37 = vadd.f32 1e-05, %v145_v34  ;;  %v144_v38 = vmul.f32 %v132_v35, %v132_v35  ;;  %v142_v39 = vmul.f32 0.03125, %v140_v36  ;;  %v148_v48 = vsub.f32 %v124_v23, %v132_v35 }
 0x182   :  { %219 = vrsqrt.f32 %v149_v37  ;;  %v146_v40 = vsub.f32 %v142_v39, %v144_v38 }
 0x184   :  { %v150_v41 = vadd.f32 1e-05, %v146_v40 }
 0x186   :  { %221 = vrsqrt.f32 %v150_v41 }
 0x18c   :  { %v220_v43 = vpop.eup %219 }
 0x18d   :  { %v153_v45 = vmul.f32 %v220_v43, %v147_v42 }
 0x18f   :  { %v162_v47 = vmul.f32 %v193_v44, %v153_v45 }
 0x190   :  { %v222_v49 = vpop.eup %221 }
 0x191   :  { %v171_v50 = vadd.f32 %v194_v46, %v162_v47  ;;  %v154_v51 = vmul.f32 %v222_v49, %v148_v48 }
 0x193   :  { %v197_v52 = vpack.c.bf16 %v171_v50, %v171_v50  ;;  %v163_v53 = vmul.f32 %v193_v44, %v154_v51 }
 0x195   :  { %182 = vst.msk [vmem:[%s302_s6] sm:$0xf] %vm181_vm2, %v197_v52  ;;  %v172_v54 = vadd.f32 %v194_v46, %v163_v53 }
 0x197   :  { %v198_v55 = vpack.c.bf16 %v172_v54, %v172_v54 }
 0x199   :  { %183 = vst.msk [vmem:[%s302_s6 + $0x4] sm:$0xf] %vm181_vm2, %v198_v55 }

// kernel: transformer_decoder.20
= control target key start
LH: loop header
LB: loop body
LE: loop exit
PB: predicated region body
PF: predicated region fallthrough
CT: control target
= control target key end

     0   :  { %s789_s12 = smov 0   ;;  %s791_s13 = smov 0   ;;  %s863_s0 = inlined_call_operand.vmem [shape: bf16[2,4,8,8], index: 0, kind: input, shape index: {}]   ;;  %s864_s1 = inlined_call_operand.vmem [shape: bf16[2,4,8,8], index: 1, kind: input, shape index: {}]   ;;  %s865_s2 = inlined_call_operand.vmem [shape: bf16[2,4,8,8], index: 2, kind: input, shape index: {}]   ;;  %s866_s3 = inlined_call_operand.vmem [shape: bf16[2,4,8,8], index: 3, kind: output, shape index: {}]  }
   0x1   :  { %s793_s14 = smov 0   ;;  %s795_s15 = smov 0  }
   0x2   :  { %s797_s16 = smov 0  }
   0x3 LB: > { %s35_s17 = sadd.s32 1, %s755_s14  ;;  %s39_s18 = sadd.s32 1, %s759_s15  ;;  %s763_s16 = sphi %s797_s16, %s13_s16   ;;  %s759_s15 = sphi %s795_s15, %s870_s15   ;;  %s755_s14 = sphi %s793_s14, %s869_s14   ;;  %s751_s13 = sphi %s791_s13, %s868_s13   ;;  %s747_s12 = sphi %s789_s12, %s867_s12  }
   0x4   : > { %p37_p0 = scmp.ge.s32.totalorder %s35_s17, 4  ;;  %p644_p1 = scmp.ge.s32.totalorder %s763_s16, 1 }
   0x5   : > { %p217_p2 = scmp.lt.s32.totalorder %s763_s16, 9 }
   0x6   : > { %s872_s17 = smov (%p37_p0, %s35_s17), 0  ;;  %s874_s18 = smov (!%p37_p0, %s39_s18), %s759_s15 }
   0x7   : > { %p218_p3 = pnand %p644_p1, %p217_p2  ;;  %p41_p4 = scmp.ge.s32.totalorder %s874_s18, 2 }
   0x8   : > { %p275_p5 = scmp.lt.s32.totalorder (!%p218_p3), %s751_s13, 1  ;;  %p277_p6 = scmp.lt.s32.totalorder (!%p218_p3), %s747_s12, 3  ;;  %vm327_vm0 = vcmask (!%p218_p3), 64512   ;;  %v765_v0 = vmov (!%p218_p3), 0.0   ;;  %vm766_vm1 = vmmov (!%p218_p3), 0   ;;  %vm324_vm2 = vcmask (!%p218_p3), 7168  }
   0x9   : > { %s876_s18 = smov (%p41_p4, %s874_s18), 0  ;;  %221 = sbr.rel (%p218_p3) target bundleno = 828 (0x33c), region = 32 }
   0xa   : > { %661 = vmatprep.subr.bf16.mxu0 (!%p218_p3), %v765_v0  ;;  %328 = vst.msk [vmem:[#allocation4] sm:$0xff] (!%p218_p3), %vm327_vm0, %v765_v0  ;;  %663 = vmatprep.mubr.msk.bf16.mxu0 (!%p218_p3), %vm766_vm1, %v765_v0  ;;  %v767_v4 = vmov (!%p218_p3), -1e+30   ;;  %v385_v5 = vlaneseq (!%p218_p3)  ;;  %v768_v14 = vmov (!%p218_p3), 0   ;;  %vm431_vm4 = vcmask (!%p218_p3), 1043456  }
   0xb   : > { %667 = vmatprep.subr.bf16.mxu1 (!%p218_p3), %v765_v0  ;;  %669 = vmatprep.mubr.msk.bf16.mxu1 (!%p218_p3), %vm766_vm1, %v765_v0  ;;  %325 = vst.msk [vmem:[#allocation2] sm:$0xff] (!%p218_p3), %vm324_vm2, %v767_v4  ;;  %326 = vst.msk [vmem:[#allocation3] sm:$0xff] (!%p218_p3), %vm324_vm2, %v765_v0  ;;  %vm491_vm5 = vcmask (!%p218_p3), 60416  }
   0xc   : > { %v386_v6 = vshrl.u32 (!%p218_p3), %v385_v5, 7  ;;  %v390_v7 = vand.u32 (!%p218_p3), 127, %v385_v5  ;;  %717 = vset.pattern.permute.xlu0 (!%p218_p3), %v768_v14  ;;  %718 = vset.pattern.permute.xlu1 (!%p218_p3), %v768_v14 }
   0xe   : > { %vm393_vm3 = vcmp.le.s32.totalorder (!%p218_p3), %v390_v7, %v386_v6 }
  0x10   : > { %s878_s13 = smov (!%p275_p5, %s751_s13), 1  ;;  %s880_s12 = smov (!%p277_p6, %s747_s12), 3 }
  0x11   : > { %s645_s19 = sshll.u32 %s878_s13, 2  ;;  %v419_v35 = vld [vmem:[#allocation4] sm:$0xff] }
  0x12   : > { %s283_s20 = sadd.s32 %s645_s19, %s880_s12  ;;  %v395_v15 = vld [vmem:[#allocation2] sm:$0xff]  ;;  %v411_v29 = vld [vmem:[#allocation3] sm:$0xff] }
  0x13   : > { %s820_s21 = sshll.u32 %s283_s20, 2 }
  0x14   : > { %s296_s24 = scalar_lea.vmem %s864_s1, %s820_s21  ;;  %s285_s27 = scalar_lea.vmem %s863_s0, %s820_s21 }
  0x15   : > { %v337_v1 = vld [vmem:[%s296_s24] sm:$0xf]  ;;  %s307_s30 = scalar_lea.vmem %s865_s2, %s820_s21  ;;  %s318_s6 = scalar_lea.vmem %s866_s3, %s820_s21 }
  0x16   : > { %v343_v2 = vsel %vm327_vm0, %v337_v1, 0  ;;  %v336_v3 = vld [vmem:[%s285_s27] sm:$0xf] }
  0x17   : > { %662 = vmatpush3.bf16.xpose.msra.mxu0 %v343_v2  ;;  %v427_v19 = vld [vmem:[%s307_s30] sm:$0xf] }
  0x18   : > { %v433_v20 = vsel %vm431_vm4, %v427_v19, 0 }
  0x19   : > { %668 = vmatpush3.bf16.msra.mxu1 %v433_v20 }
  0x1e   : > { %664 = vmatmul.mubr.msk.bf16.vlgmr.msra.gmra.mrb[0].mxu0 %vm327_vm0, %v336_v3 }
  0xf1   : > { %v379_v8 = vpop.f32.mrb[0].mxu0 }
  0xf2   : > { %v394_v9 = vsel %vm393_vm3, %v379_v8, -1e+30  ;;  %v665_v10 = vpop.f32.mrb[1].mxu0 }
  0xf3   : > { %v382_v11 = vpop.f32.mrb[2].mxu0  ;;  %v396_v12 = vsel %vm327_vm0, %v394_v9, -inf }
  0xf4   : > { %397 = vmax.xlane.f32.xlu0 %v396_v12  ;;  %v666_v13 = vpop.f32.mrb[3].mxu0 }
 0x181   : > { %v398_v16 = vpop.xlane.xlu0 %397 }
 0x182   : > { %v399_v17 = vmax.f32 %v395_v15, %v398_v16 }
 0x184   : > { %v400_v18 = vsub.f32 %v395_v15, %v399_v17  ;;  %477 = vst.msk [vmem:[#allocation2] sm:$0xff] %vm324_vm2, %v399_v17  ;;  %405 = vperm.xlu0 %717, %v399_v17  }
 0x186   : > { %v401_v27 = vmul.f32 1.442695, %v400_v18 }
 0x203   : > { %v406_v21 = vpop.permute.xlu0 %405 }
 0x204   : > { %v408_v22 = vsub.f32 %v394_v9, %v406_v21 }
 0x206   : > { %v409_v23 = vmul.f32 1.442695, %v408_v22 }
 0x208   : > { %719 = vpow2.f32 %v409_v23 }
 0x209   : > { %721 = vpow2.f32 %v401_v27 }
 0x212   : > { %v720_v24 = vpop.eup %719 }
 0x213   : > { %v413_v25 = vsel %vm327_vm0, %v720_v24, 0.0  ;;  %v426_v26 = vpack.c.bf16 %v720_v24, %v720_v24  ;;  %v722_v28 = vpop.eup %721 }
 0x214   : > { %414 = vadd.xlane.f32.xlu1 %v413_v25  ;;  %v412_v30 = vmul.f32 %v722_v28, %v411_v29 }
 0x215   : > { %670 = vmatmul.mubr.msk.bf16.vlgmr.msra.gmra.mrb[0].mxu1 %vm327_vm0, %v426_v26 }
 0x225   : > { %422 = vperm.xlu1 %718, %v722_v28  }
 0x2a1   : > { %v415_v31 = vpop.xlane.xlu1 %414 }
 0x2a2   : > { %v416_v32 = vadd.f32 %v415_v31, %v412_v30 }
 0x2a4   : > { %418 = vst.msk [vmem:[#allocation3] sm:$0xff] %vm324_vm2, %v416_v32 }
 0x2a5   : > { %v423_v36 = vpop.permute.xlu1 %422 }
 0x2a6   : > { %v425_v37 = vmul.f32 %v423_v36, %v419_v35 }
 0x2ab   : > { %v481_v33 = vld [vmem:[#allocation3] sm:$0xff] }
 0x2ac   : > { %723 = vrcp.f32 %v481_v33 }
 0x2b6   : > { %v724_v34 = vpop.eup %723 }
 0x2b7   : > { %486 = vperm.xlu1 %718, %v724_v34  }
 0x2e8   : > { %v469_v38 = vpop.f32.mrb[0].mxu1 }
 0x2e9   : > { %v475_v39 = vadd.f32 %v469_v38, %v425_v37  ;;  %v671_v40 = vpop.f32.mrb[1].mxu1 }
 0x2ea   : > { %v472_v41 = vpop.f32.mrb[2].mxu1 }
 0x2eb   : > { %476 = vst.msk [vmem:[#allocation4] sm:$0xff] %vm327_vm0, %v475_v39  ;;  %v672_v42 = vpop.f32.mrb[3].mxu1 }
 0x2f2   : > { %v483_v43 = vld [vmem:[#allocation4] sm:$0xff] }
 0x336   : > { %v487_v44 = vpop.permute.xlu1 %486 }
 0x337   : > { %v489_v45 = vmul.f32 %v487_v44, %v483_v43 }
 0x339   : > { %v490_v46 = vpack.c.bf16 %v489_v45, %v489_v45 }
 0x33b   : > { %492 = vst.msk [vmem:[%s318_s6] sm:$0xf] %vm491_vm5, %v490_v46 }
 0x33c PF: > { %s13_s16 = sadd.s32 1, %s763_s16   ;;  %s867_s12 = smov %s755_s14 }
 0x33d   : > { %p10_p7 = scmp.ge.s32.totalorder %s13_s16, 10   ;;  %s868_s13 = smov %s759_s15 }
 0x33e   : > { %s869_s14 = smov %s872_s17  ;;  %s870_s15 = smov %s876_s18 }
 0x33f   :  { %12 = sbr.rel (!%p10_p7) target bundleno = 3 (0x3), region = 80 }

// kernel: transformer_decoder.22
= control target key start
LH: loop header
LB: loop body
LE: loop exit
PB: predicated region body
PF: predicated region fallthrough
CT: control target
= control target key end

     0   :  { %vm19_vm0 = vcmask 261120   ;;  %v150_v0 = vmov 0.0   ;;  %vm151_vm1 = vmmov 0   ;;  %vm118_vm2 = vcmask 257024   ;;  %s195_s1 = inlined_call_operand.vmem [shape: bf16[32,32], index: 1, kind: input, shape index: {}]   ;;  %s196_s0 = inlined_call_operand.vmem [shape: bf16[16,32], index: 0, kind: input, shape index: {}]   ;;  %s197_s2 = inlined_call_operand.vmem [shape: f32[1,32], index: 2, kind: input, shape index: {}]   ;;  %s198_s3 = inlined_call_operand.vmem [shape: bf16[16,32], index: 3, kind: output, shape index: {}]  }
   0x1   :  { %137 = vmatprep.subr.bf16.mxu0 %v150_v0  ;;  %v147_v1 = vld [vmem:[%s195_s1] sm:$0xff]   ;;  %141 = vmatprep.mubr.msk.bf16.mxu0 %vm151_vm1, %v150_v0  ;;  %20 = vst.msk [vmem:[#allocation2] sm:$0xff] %vm19_vm0, %v150_v0  ;;  %21 = vst.msk [vmem:[#allocation2 + $0x8] sm:$0xff] %vm19_vm0, %v150_v0  ;;  %v148_v2 = vld [vmem:[%s195_s1 + $0x8] sm:$0xff]  }
   0x2   :  { %138 = vmatpush3.bf16.msra.mxu0 %v147_v1  ;;  %v149_v3 = vld [vmem:[%s196_s0] sm:$0xff]  }
   0x3   :  { %139 = vmatprep.subr.bf16.mxu0 %v150_v0  ;;  %v129_v12 = vld [vmem:[%s197_s2] ss:$0 sm:$0xff] }
   0x6   :  { %140 = vmatpush3.bf16.msra.mxu0 %v148_v2 }
   0x8   :  { %v22_v4 = vld [vmem:[#allocation2] sm:$0xff]  ;;  %v23_v6 = vld [vmem:[#allocation2 + $0x8] sm:$0xff] }
   0x9   :  { %142 = vmatmul.mubr.msk.bf16.vlgmr.msra.gmra.mrb[0].mxu0 %vm19_vm0, %v149_v3 }
  0xdc   :  { %v85_v5 = vpop.f32.mrb[0].mxu0 }
  0xdd   :  { %v92_v7 = vadd.f32 %v85_v5, %v22_v4  ;;  %v143_v8 = vpop.f32.mrb[1].mxu0 }
  0xde   :  { %v88_v9 = vpop.f32.mrb[2].mxu0 }
  0xdf   :  { %94 = vst.msk [vmem:[#allocation2] sm:$0xff] %vm19_vm0, %v92_v7  ;;  %v93_v10 = vadd.f32 %v88_v9, %v23_v6  ;;  %v144_v11 = vpop.f32.mrb[3].mxu0 }
  0xe1   :  { %95 = vst.msk [vmem:[#allocation2 + $0x8] sm:$0xff] %vm19_vm0, %v93_v10 }
  0xe6   :  { %v99_v13 = vld [vmem:[#allocation2] sm:$0xff] }
  0xe7   :  { %v108_v14 = vadd.f32 %v129_v12, %v99_v13 }
  0xe8   :  { %v100_v15 = vld [vmem:[#allocation2 + $0x8] sm:$0xff] }
  0xe9   :  { %v132_v16 = vpack.c.bf16 %v108_v14, %v108_v14  ;;  %v109_v17 = vadd.f32 %v129_v12, %v100_v15 }
  0xeb   :  { %119 = vst.msk [vmem:[%s198_s3] sm:$0xf] %vm118_vm2, %v132_v16  ;;  %v133_v18 = vpack.c.bf16 %v109_v17, %v109_v17 }
  0xed   :  { %120 = vst.msk [vmem:[%s198_s3 + $0x4] sm:$0xf] %vm118_vm2, %v133_v18 }

// kernel: transformer_decoder.23
= control target key start
LH: loop header
LB: loop body
LE: loop exit
PB: predicated region body
PF: predicated region fallthrough
CT: control target
= control target key end

     0   :  { %vm19_vm0 = vcmask 523264   ;;  %v151_v0 = vmov 0.0   ;;  %vm152_vm1 = vmmov 0   ;;  %vm47_vm2 = vcmask 261120   ;;  %s195_s1 = inlined_call_operand.vmem [shape: bf16[32,64], index: 1, kind: input, shape index: {}]   ;;  %s196_s0 = inlined_call_operand.vmem [shape: bf16[16,32], index: 0, kind: input, shape index: {}]   ;;  %s197_s2 = inlined_call_operand.vmem [shape: f32[1,64], index: 2, kind: input, shape index: {}]   ;;  %s198_s3 = inlined_call_operand.vmem [shape: bf16[16,64], index: 3, kind: output, shape index: {}]  }
   0x1   :  { %138 = vmatprep.subr.bf16.mxu0 %v151_v0  ;;  %v148_v1 = vld [vmem:[%s195_s1] sm:$0xff]   ;;  %142 = vmatprep.mubr.msk.bf16.mxu0 %vm152_vm1, %v151_v0  ;;  %20 = vst.msk [vmem:[#allocation2] sm:$0xff] %vm19_vm0, %v151_v0  ;;  %21 = vst.msk [vmem:[#allocation2 + $0x8] sm:$0xff] %vm19_vm0, %v151_v0  ;;  %v149_v2 = vld [vmem:[%s195_s1 + $0x8] sm:$0xff]   ;;  %vm119_vm3 = vcmask 519168  }
   0x2   :  { %139 = vmatpush3.bf16.msra.mxu0 %v148_v1  ;;  %v150_v3 = vld [vmem:[%s196_s0] sm:$0xff]  }
   0x3   :  { %140 = vmatprep.subr.bf16.mxu0 %v151_v0  ;;  %v130_v12 = vld [vmem:[%s197_s2] ss:$0 sm:$0xff] }
   0x6   :  { %141 = vmatpush3.bf16.msra.mxu0 %v149_v2 }
   0x8   :  { %v22_v4 = vld [vmem:[#allocation2] sm:$0xff]  ;;  %v23_v6 = vld [vmem:[#allocation2 + $0x8] sm:$0xff] }
   0x9   :  { %143 = vmatmul.mubr.msk.bf16.vlgmr.msra.gmra.mrb[0].mxu0 %vm47_vm2, %v150_v3 }
  0xdc   :  { %v85_v5 = vpop.f32.mrb[0].mxu0 }
  0xdd   :  { %v92_v7 = vadd.f32 %v85_v5, %v22_v4  ;;  %v144_v8 = vpop.f32.mrb[1].mxu0 }
  0xde   :  { %v88_v9 = vpop.f32.mrb[2].mxu0 }
  0xdf   :  { %95 = vst.msk [vmem:[#allocation2] sm:$0xff] %vm19_vm0, %v92_v7  ;;  %v93_v10 = vadd.f32 %v88_v9, %v23_v6  ;;  %v145_v11 = vpop.f32.mrb[3].mxu0 }
  0xe1   :  { %96 = vst.msk [vmem:[#allocation2 + $0x8] sm:$0xff] %vm19_vm0, %v93_v10 }
  0xe6   :  { %v100_v13 = vld [vmem:[#allocation2] sm:$0xff] }
  0xe7   :  { %v109_v14 = vadd.f32 %v130_v12, %v100_v13 }
  0xe8   :  { %v101_v15 = vld [vmem:[#allocation2 + $0x8] sm:$0xff] }
  0xe9   :  { %v133_v16 = vpack.c.bf16 %v109_v14, %v109_v14  ;;  %v110_v17 = vadd.f32 %v130_v12, %v101_v15 }
  0xeb   :  { %120 = vst.msk [vmem:[%s198_s3] sm:$0xf] %vm119_vm3, %v133_v16  ;;  %v134_v18 = vpack.c.bf16 %v110_v17, %v110_v17 }
  0xed   :  { %121 = vst.msk [vmem:[%s198_s3 + $0x4] sm:$0xf] %vm119_vm3, %v134_v18 }

// kernel: transformer_decoder.26
= control target key start
LH: loop header
LB: loop body
LE: loop exit
PB: predicated region body
PF: predicated region fallthrough
CT: control target
= control target key end

     0   :  { %vm19_vm0 = vcmask 523264   ;;  %v153_v0 = vmov 0.0   ;;  %vm154_vm1 = vmmov 0   ;;  %vm47_vm2 = vcmask 261120   ;;  %s197_s1 = inlined_call_operand.vmem [shape: bf16[32,64], index: 1, kind: input, shape index: {}]   ;;  %s198_s0 = inlined_call_operand.vmem [shape: bf16[16,32], index: 0, kind: input, shape index: {}]   ;;  %s199_s2 = inlined_call_operand.vmem [shape: f32[1,64], index: 2, kind: input, shape index: {}]   ;;  %s200_s3 = inlined_call_operand.vmem [shape: bf16[16,64], index: 3, kind: output, shape index: {}]  }
   0x1   :  { %140 = vmatprep.subr.bf16.mxu0 %v153_v0  ;;  %v150_v1 = vld [vmem:[%s197_s1] sm:$0xff]   ;;  %144 = vmatprep.mubr.msk.bf16.mxu0 %vm154_vm1, %v153_v0  ;;  %20 = vst.msk [vmem:[#allocation2] sm:$0xff] %vm19_vm0, %v153_v0  ;;  %21 = vst.msk [vmem:[#allocation2 + $0x8] sm:$0xff] %vm19_vm0, %v153_v0  ;;  %v151_v2 = vld [vmem:[%s197_s1 + $0x8] sm:$0xff]   ;;  %vm121_vm3 = vcmask 519168  }
   0x2   :  { %141 = vmatpush3.bf16.msra.mxu0 %v150_v1  ;;  %v152_v3 = vld [vmem:[%s198_s0] sm:$0xff]  }
   0x3   :  { %142 = vmatprep.subr.bf16.mxu0 %v153_v0  ;;  %v132_v12 = vld [vmem:[%s199_s2] ss:$0 sm:$0xff] }
   0x6   :  { %143 = vmatpush3.bf16.msra.mxu0 %v151_v2 }
   0x8   :  { %v22_v4 = vld [vmem:[#allocation2] sm:$0xff]  ;;  %v23_v6 = vld [vmem:[#allocation2 + $0x8] sm:$0xff] }
   0x9   :  { %145 = vmatmul.mubr.msk.bf16.vlgmr.msra.gmra.mrb[0].mxu0 %vm47_vm2, %v152_v3 }
  0xdc   :  { %v85_v5 = vpop.f32.mrb[0].mxu0 }
  0xdd   :  { %v92_v7 = vadd.f32 %v85_v5, %v22_v4  ;;  %v146_v8 = vpop.f32.mrb[1].mxu0 }
  0xde   :  { %v88_v9 = vpop.f32.mrb[2].mxu0 }
  0xdf   :  { %95 = vst.msk [vmem:[#allocation2] sm:$0xff] %vm19_vm0, %v92_v7  ;;  %v93_v10 = vadd.f32 %v88_v9, %v23_v6  ;;  %v147_v11 = vpop.f32.mrb[3].mxu0 }
  0xe1   :  { %96 = vst.msk [vmem:[#allocation2 + $0x8] sm:$0xff] %vm19_vm0, %v93_v10 }
  0xe6   :  { %v100_v13 = vld [vmem:[#allocation2] sm:$0xff] }
  0xe7   :  { %v109_v14 = vadd.f32 %v132_v12, %v100_v13 }
  0xe8   :  { %v101_v15 = vld [vmem:[#allocation2 + $0x8] sm:$0xff] }
  0xe9   :  { %v111_v16 = vmax.f32 %v109_v14, 0.0  ;;  %v110_v17 = vadd.f32 %v132_v12, %v101_v15 }
  0xeb   :  { %v135_v18 = vpack.c.bf16 %v111_v16, %v111_v16  ;;  %v112_v19 = vmax.f32 %v110_v17, 0.0 }
  0xed   :  { %122 = vst.msk [vmem:[%s200_s3] sm:$0xf] %vm121_vm3, %v135_v18  ;;  %v136_v20 = vpack.c.bf16 %v112_v19, %v112_v19 }
  0xef   :  { %123 = vst.msk [vmem:[%s200_s3 + $0x4] sm:$0xf] %vm121_vm3, %v136_v20 }

// kernel: transformer_decoder.24
= control target key start
LH: loop header
LB: loop body
LE: loop exit
PB: predicated region body
PF: predicated region fallthrough
CT: control target
= control target key end

     0   :  { %s772_s12 = smov 0   ;;  %s774_s13 = smov 0   ;;  %s846_s0 = inlined_call_operand.vmem [shape: bf16[2,4,8,8], index: 0, kind: input, shape index: {}]   ;;  %s847_s1 = inlined_call_operand.vmem [shape: bf16[2,4,8,8], index: 1, kind: input, shape index: {}]   ;;  %s848_s2 = inlined_call_operand.vmem [shape: bf16[2,4,8,8], index: 2, kind: input, shape index: {}]   ;;  %s849_s3 = inlined_call_operand.vmem [shape: bf16[2,4,8,8], index: 3, kind: output, shape index: {}]  }
   0x1   :  { %s776_s14 = smov 0   ;;  %s778_s15 = smov 0  }
   0x2   :  { %s780_s16 = smov 0  }
   0x3 LB: > { %s35_s17 = sadd.s32 1, %s738_s14  ;;  %s39_s18 = sadd.s32 1, %s742_s15  ;;  %s746_s16 = sphi %s780_s16, %s13_s16   ;;  %s742_s15 = sphi %s778_s15, %s853_s15   ;;  %s738_s14 = sphi %s776_s14, %s852_s14   ;;  %s734_s13 = sphi %s774_s13, %s851_s13   ;;  %s730_s12 = sphi %s772_s12, %s850_s12  }
   0x4   : > { %p37_p0 = scmp.ge.s32.totalorder %s35_s17, 4  ;;  %p627_p1 = scmp.ge.s32.totalorder %s746_s16, 1 }
   0x5   : > { %p217_p2 = scmp.lt.s32.totalorder %s746_s16, 9 }
   0x6   : > { %s855_s17 = smov (%p37_p0, %s35_s17), 0  ;;  %s857_s18 = smov (!%p37_p0, %s39_s18), %s742_s15 }
   0x7   : > { %p218_p3 = pnand %p627_p1, %p217_p2  ;;  %p41_p4 = scmp.ge.s32.totalorder %s857_s18, 2 }
   0x8   : > { %p275_p5 = scmp.lt.s32.totalorder (!%p218_p3), %s734_s13, 1  ;;  %p277_p6 = scmp.lt.s32.totalorder (!%p218_p3), %s730_s12, 3  ;;  %vm327_vm0 = vcmask (!%p218_p3), 64512   ;;  %v748_v0 = vmov (!%p218_p3), 0.0   ;;  %vm749_vm1 = vmmov (!%p218_p3), 0   ;;  %vm324_vm2 = vcmask (!%p218_p3), 7168  }
   0x9   : > { %s859_s18 = smov (%p41_p4, %s857_s18), 0  ;;  %221 = sbr.rel (%p218_p3) target bundleno = 827 (0x33b), region = 32 }
   0xa   : > { %644 = vmatprep.subr.bf16.mxu0 (!%p218_p3), %v748_v0  ;;  %328 = vst.msk [vmem:[#allocation4] sm:$0xff] (!%p218_p3), %vm327_vm0, %v748_v0  ;;  %646 = vmatprep.mubr.msk.bf16.mxu0 (!%p218_p3), %vm749_vm1, %v748_v0  ;;  %v750_v4 = vmov (!%p218_p3), -1e+30   ;;  %v751_v10 = vmov (!%p218_p3), 0   ;;  %vm414_vm3 = vcmask (!%p218_p3), 1043456   ;;  %vm474_vm4 = vcmask (!%p218_p3), 60416  }
   0xb   : > { %650 = vmatprep.subr.bf16.mxu1 (!%p218_p3), %v748_v0  ;;  %652 = vmatprep.mubr.msk.bf16.mxu1 (!%p218_p3), %vm749_vm1, %v748_v0  ;;  %325 = vst.msk [vmem:[#allocation2] sm:$0xff] (!%p218_p3), %vm324_vm2, %v750_v4  ;;  %326 = vst.msk [vmem:[#allocation3] sm:$0xff] (!%p218_p3), %vm324_vm2, %v748_v0 }
   0xc   : > { %700 = vset.pattern.permute.xlu0 (!%p218_p3), %v751_v10  ;;  %701 = vset.pattern.permute.xlu1 (!%p218_p3), %v751_v10 }
  0x10   : > { %s861_s13 = smov (!%p275_p5, %s734_s13), 1  ;;  %s863_s12 = smov (!%p277_p6, %s730_s12), 3 }
  0x11   : > { %s628_s19 = sshll.u32 %s861_s13, 2  ;;  %v402_v31 = vld [vmem:[#allocation4] sm:$0xff] }
  0x12   : > { %s283_s20 = sadd.s32 %s628_s19, %s863_s12  ;;  %v378_v11 = vld [vmem:[#allocation2] sm:$0xff]  ;;  %v394_v25 = vld [vmem:[#allocation3] sm:$0xff] }
  0x13   : > { %s803_s21 = sshll.u32 %s283_s20, 2 }
  0x14   : > { %s296_s24 = scalar_lea.vmem %s847_s1, %s803_s21  ;;  %s285_s27 = scalar_lea.vmem %s846_s0, %s803_s21 }
  0x15   : > { %v330_v1 = vld [vmem:[%s296_s24] sm:$0xf]  ;;  %s307_s30 = scalar_lea.vmem %s848_s2, %s803_s21  ;;  %s318_s6 = scalar_lea.vmem %s849_s3, %s803_s21 }
  0x16   : > { %v336_v2 = vsel %vm327_vm0, %v330_v1, 0  ;;  %v329_v3 = vld [vmem:[%s285_s27] sm:$0xf] }
  0x17   : > { %645 = vmatpush3.bf16.xpose.msra.mxu0 %v336_v2  ;;  %v410_v15 = vld [vmem:[%s307_s30] sm:$0xf] }
  0x18   : > { %v416_v16 = vsel %vm414_vm3, %v410_v15, 0 }
  0x19   : > { %651 = vmatpush3.bf16.msra.mxu1 %v416_v16 }
  0x1e   : > { %647 = vmatmul.mubr.msk.bf16.vlgmr.msra.gmra.mrb[0].mxu0 %vm327_vm0, %v329_v3 }
  0xf1   : > { %v372_v5 = vpop.f32.mrb[0].mxu0 }
  0xf2   : > { %v648_v6 = vpop.f32.mrb[1].mxu0  ;;  %v379_v7 = vsel %vm327_vm0, %v372_v5, -inf }
  0xf3   : > { %380 = vmax.xlane.f32.xlu0 %v379_v7  ;;  %v375_v8 = vpop.f32.mrb[2].mxu0 }
  0xf4   : > { %v649_v9 = vpop.f32.mrb[3].mxu0 }
 0x180   : > { %v381_v12 = vpop.xlane.xlu0 %380 }
 0x181   : > { %v382_v13 = vmax.f32 %v378_v11, %v381_v12 }
 0x183   : > { %v383_v14 = vsub.f32 %v378_v11, %v382_v13  ;;  %460 = vst.msk [vmem:[#allocation2] sm:$0xff] %vm324_vm2, %v382_v13  ;;  %388 = vperm.xlu0 %700, %v382_v13  }
 0x185   : > { %v384_v23 = vmul.f32 1.442695, %v383_v14 }
 0x202   : > { %v389_v17 = vpop.permute.xlu0 %388 }
 0x203   : > { %v391_v18 = vsub.f32 %v372_v5, %v389_v17 }
 0x205   : > { %v392_v19 = vmul.f32 1.442695, %v391_v18 }
 0x207   : > { %702 = vpow2.f32 %v392_v19 }
 0x208   : > { %704 = vpow2.f32 %v384_v23 }
 0x211   : > { %v703_v20 = vpop.eup %702 }
 0x212   : > { %v396_v21 = vsel %vm327_vm0, %v703_v20, 0.0  ;;  %v409_v22 = vpack.c.bf16 %v703_v20, %v703_v20  ;;  %v705_v24 = vpop.eup %704 }
 0x213   : > { %397 = vadd.xlane.f32.xlu1 %v396_v21  ;;  %v395_v26 = vmul.f32 %v705_v24, %v394_v25 }
 0x214   : > { %653 = vmatmul.mubr.msk.bf16.vlgmr.msra.gmra.mrb[0].mxu1 %vm327_vm0, %v409_v22 }
 0x224   : > { %405 = vperm.xlu1 %701, %v705_v24  }
 0x2a0   : > { %v398_v27 = vpop.xlane.xlu1 %397 }
 0x2a1   : > { %v399_v28 = vadd.f32 %v398_v27, %v395_v26 }
 0x2a3   : > { %401 = vst.msk [vmem:[#allocation3] sm:$0xff] %vm324_vm2, %v399_v28 }
 0x2a4   : > { %v406_v32 = vpop.permute.xlu1 %405 }
 0x2a5   : > { %v408_v33 = vmul.f32 %v406_v32, %v402_v31 }
 0x2aa   : > { %v464_v29 = vld [vmem:[#allocation3] sm:$0xff] }
 0x2ab   : > { %706 = vrcp.f32 %v464_v29 }
 0x2b5   : > { %v707_v30 = vpop.eup %706 }
 0x2b6   : > { %469 = vperm.xlu1 %701, %v707_v30  }
 0x2e7   : > { %v452_v34 = vpop.f32.mrb[0].mxu1 }
 0x2e8   : > { %v458_v35 = vadd.f32 %v452_v34, %v408_v33  ;;  %v654_v36 = vpop.f32.mrb[1].mxu1 }
 0x2e9   : > { %v455_v37 = vpop.f32.mrb[2].mxu1 }
 0x2ea   : > { %459 = vst.msk [vmem:[#allocation4] sm:$0xff] %vm327_vm0, %v458_v35  ;;  %v655_v38 = vpop.f32.mrb[3].mxu1 }
 0x2f1   : > { %v466_v39 = vld [vmem:[#allocation4] sm:$0xff] }
 0x335   : > { %v470_v40 = vpop.permute.xlu1 %469 }
 0x336   : > { %v472_v41 = vmul.f32 %v470_v40, %v466_v39 }
 0x338   : > { %v473_v42 = vpack.c.bf16 %v472_v41, %v472_v41 }
 0x33a   : > { %475 = vst.msk [vmem:[%s318_s6] sm:$0xf] %vm474_vm4, %v473_v42 }
 0x33b PF: > { %s13_s16 = sadd.s32 1, %s746_s16   ;;  %s850_s12 = smov %s738_s14 }
 0x33c   : > { %p10_p7 = scmp.ge.s32.totalorder %s13_s16, 10   ;;  %s851_s13 = smov %s742_s15 }
 0x33d   : > { %s852_s14 = smov %s855_s17  ;;  %s853_s15 = smov %s859_s18 }
 0x33e   :  { %12 = sbr.rel (!%p10_p7) target bundleno = 3 (0x3), region = 76 }

// kernel: transformer_decoder.27
= control target key start
LH: loop header
LB: loop body
LE: loop exit
PB: predicated region body
PF: predicated region fallthrough
CT: control target
= control target key end

     0   :  { %vm28_vm0 = vcmask 261120   ;;  %v250_v0 = vmov 0.0   ;;  %vm251_vm1 = vmmov 0   ;;  %vm72_vm2 = vcmask 523264   ;;  %s328_s1 = inlined_call_operand.vmem [shape: bf16[64,32], index: 1, kind: input, shape index: {}]   ;;  %s329_s0 = inlined_call_operand.vmem [shape: bf16[16,64], index: 0, kind: input, shape index: {}]   ;;  %s330_s3 = inlined_call_operand.vmem [shape: bf16[16,32], index: 3, kind: input, shape index: {}]   ;;  %s331_s2 = inlined_call_operand.vmem [shape: f32[1,32], index: 2, kind: input, shape index: {}]   ;;  %s332_s4 = inlined_call_operand.vmem [shape: f32[1,32], index: 4, kind: input, shape index: {}]   ;;  %s333_s5 = inlined_call_operand.vmem [shape: f32[1,32], index: 5, kind: input, shape index: {}]   ;;  %s334_s6 = inlined_call_operand.vmem [shape: bf16[16,32], index: 6, kind: output, shape index: {}]  }
   0x1   :  { %227 = vmatprep.subr.bf16.mxu0 %v250_v0  ;;  %v241_v1 = vld [vmem:[%s328_s1] sm:$0xff]   ;;  %235 = vmatprep.mubr.msk.bf16.mxu0 %vm251_vm1, %v250_v0  ;;  %29 = vst.msk [vmem:[#allocation2] sm:$0xff] %vm28_vm0, %v250_v0  ;;  %30 = vst.msk [vmem:[#allocation2 + $0x8] sm:$0xff] %vm28_vm0, %v250_v0  ;;  %v242_v2 = vld [vmem:[%s328_s1 + $0x8] sm:$0xff]   ;;  %vm198_vm3 = vcmask 257024  }
   0x2   :  { %228 = vmatpush3.bf16.msra.mxu0 %v241_v1  ;;  %v243_v3 = vld [vmem:[%s328_s1 + $0x10] sm:$0xff]   ;;  %v244_v4 = vld [vmem:[%s328_s1 + $0x18] sm:$0xff]   ;;  %v245_v5 = vld [vmem:[%s329_s0] sm:$0xff]  }
   0x3   :  { %229 = vmatprep.subr.bf16.mxu0 %v250_v0  ;;  %v219_v14 = vld [vmem:[%s330_s3] sm:$0xff]  }
   0x4   :  { %v211_v15 = vld [vmem:[%s331_s2] ss:$0 sm:$0xff]  ;;  %v220_v16 = vunpack.c.l.bf16 %v219_v14  ;;  %v221_v19 = vunpack.c.h.bf16 %v219_v14 }
   0x5   :  { %v212_v46 = vld [vmem:[%s332_s4] ss:$0 sm:$0xff] }
   0x6   :  { %230 = vmatpush3.bf16.msra.mxu0 %v242_v2  ;;  %v213_v48 = vld [vmem:[%s333_s5] ss:$0 sm:$0xff] }
   0x7   :  { %231 = vmatprep.subr.bf16.mxu0 %v250_v0 }
   0x8   :  { %v31_v6 = vld [vmem:[#allocation2] sm:$0xff]  ;;  %v32_v8 = vld [vmem:[#allocation2 + $0x8] sm:$0xff] }
   0xa   :  { %232 = vmatpush3.bf16.msra.mxu0 %v243_v3 }
   0xb   :  { %233 = vmatprep.subr.bf16.mxu0 %v250_v0 }
   0xe   :  { %234 = vmatpush3.bf16.msra.mxu0 %v244_v4 }
  0x11   :  { %236 = vmatmul.mubr.msk.bf16.vlgmr.msra.gmra.mrb[0].mxu0 %vm72_vm2, %v245_v5 }
  0xe4   :  { %v110_v7 = vpop.f32.mrb[0].mxu0 }
  0xe5   :  { %v117_v9 = vadd.f32 %v110_v7, %v31_v6  ;;  %v237_v10 = vpop.f32.mrb[1].mxu0 }
  0xe6   :  { %v113_v11 = vpop.f32.mrb[2].mxu0 }
  0xe7   :  { %120 = vst.msk [vmem:[#allocation2] sm:$0xff] %vm28_vm0, %v117_v9  ;;  %v118_v12 = vadd.f32 %v113_v11, %v32_v8  ;;  %v238_v13 = vpop.f32.mrb[3].mxu0 }
  0xe9   :  { %121 = vst.msk [vmem:[#allocation2 + $0x8] sm:$0xff] %vm28_vm0, %v118_v12 }
  0xee   :  { %v125_v17 = vld [vmem:[#allocation2] sm:$0xff] }
  0xef   :  { %v134_v18 = vadd.f32 %v211_v15, %v125_v17 }
  0xf0   :  { %v126_v20 = vld [vmem:[#allocation2 + $0x8] sm:$0xff] }
  0xf1   :  { %v140_v21 = vadd.f32 %v220_v16, %v134_v18  ;;  %v135_v22 = vadd.f32 %v211_v15, %v126_v20 }
  0xf3   :  { %v142_v23 = vsel %vm28_vm0, %v140_v21, 0.0  ;;  %v150_v24 = vmul.f32 %v140_v21, %v140_v21  ;;  %v141_v25 = vadd.f32 %v221_v19, %v135_v22 }
  0xf4   :  { %143 = vadd.xlane.f32.xlu0 %v142_v23 }
  0xf5   :  { %v152_v26 = vsel %vm28_vm0, %v150_v24, 0.0  ;;  %v151_v27 = vmul.f32 %v141_v25, %v141_v25  ;;  %v145_v28 = vsel %vm28_vm0, %v141_v25, 0.0 }
  0xf6   :  { %153 = vadd.xlane.f32.xlu1 %v152_v26 }
  0xf7   :  { %v155_v29 = vsel %vm28_vm0, %v151_v27, 0.0 }
  0xf8   :  { %146 = vadd.xlane.f32.xlu0 %v145_v28 }
  0xfa   :  { %156 = vadd.xlane.f32.xlu1 %v155_v29 }
 0x181   :  { %v144_v30 = vpop.xlane.xlu0 %143 }
 0x182   :  { %v148_v31 = vmul.f32 0.03125, %v144_v30 }
 0x183   :  { %v154_v32 = vpop.xlane.xlu1 %153 }
 0x184   :  { %v160_v33 = vmul.f32 %v148_v31, %v148_v31  ;;  %v158_v34 = vmul.f32 0.03125, %v154_v32  ;;  %v164_v44 = vsub.f32 %v140_v21, %v148_v31 }
 0x185   :  { %v147_v35 = vpop.xlane.xlu0 %146 }
 0x186   :  { %v162_v36 = vsub.f32 %v158_v34, %v160_v33  ;;  %v149_v37 = vmul.f32 0.03125, %v147_v35 }
 0x187   :  { %v157_v38 = vpop.xlane.xlu1 %156 }
 0x188   :  { %v166_v39 = vadd.f32 1e-05, %v162_v36  ;;  %v161_v40 = vmul.f32 %v149_v37, %v149_v37  ;;  %v159_v41 = vmul.f32 0.03125, %v157_v38  ;;  %v165_v50 = vsub.f32 %v141_v25, %v149_v37 }
 0x18a   :  { %246 = vrsqrt.f32 %v166_v39  ;;  %v163_v42 = vsub.f32 %v159_v41, %v161_v40 }
 0x18c   :  { %v167_v43 = vadd.f32 1e-05, %v163_v42 }
 0x18e   :  { %248 = vrsqrt.f32 %v167_v43 }
 0x194   :  { %v247_v45 = vpop.eup %246 }
 0x195   :  { %v170_v47 = vmul.f32 %v247_v45, %v164_v44 }
 0x197   :  { %v179_v49 = vmul.f32 %v212_v46, %v170_v47 }
 0x198   :  { %v249_v51 = vpop.eup %248 }
 0x199   :  { %v188_v52 = vadd.f32 %v213_v48, %v179_v49  ;;  %v171_v53 = vmul.f32 %v249_v51, %v165_v50 }
 0x19b   :  { %v216_v54 = vpack.c.bf16 %v188_v52, %v188_v52  ;;  %v180_v55 = vmul.f32 %v212_v46, %v171_v53 }
 0x19d   :  { %199 = vst.msk [vmem:[%s334_s6] sm:$0xf] %vm198_vm3, %v216_v54  ;;  %v189_v56 = vadd.f32 %v213_v48, %v180_v55 }
 0x19f   :  { %v217_v57 = vpack.c.bf16 %v189_v56, %v189_v56 }
 0x1a1   :  { %200 = vst.msk [vmem:[%s334_s6 + $0x4] sm:$0xf] %vm198_vm3, %v217_v57 }

// kernel: transformer_decoder.37
= control target key start
LH: loop header
LB: loop body
LE: loop exit
PB: predicated region body
PF: predicated region fallthrough
CT: control target
= control target key end

     0   :  { %v177_v1 = vmov 0.0   ;;  %vm178_vm0 = vmmov 0   ;;  %vm20_vm1 = vcmask 261120   ;;  %s233_s0 = inlined_call_operand.vmem [shape: bf16[16,32], index: 0, kind: input, shape index: {}]   ;;  %s234_s1 = inlined_call_operand.vmem [shape: bf16[32,32], index: 1, kind: input, shape index: {}]   ;;  %s235_s2 = inlined_call_operand.vmem [shape: f32[1,32], index: 2, kind: input, shape index: {}]   ;;  %s236_s3 = inlined_call_operand.hbm [shape: f32[16,32], index: 3, kind: output, shape index: {}]  }
   0x1   :  { %v150_v0 = vld [vmem:[%s234_s1] sm:$0xff]   ;;  %137 = vmatprep.subr.bf16.mxu0 %v177_v1  ;;  %v151_v2 = vld [vmem:[%s234_s1 + $0x8] sm:$0xff]   ;;  %141 = vmatprep.mubr.msk.bf16.mxu0 %vm178_vm0, %v177_v1  ;;  %21 = vst.msk [vmem:[#allocation2] sm:$0xff] %vm20_vm1, %v177_v1  ;;  %22 = vst.msk [vmem:[#allocation2 + $0x8] sm:$0xff] %vm20_vm1, %v177_v1 }
   0x2   :  { %138 = vmatpush3.bf16.msra.mxu0 %v150_v0 }
   0x3   :  { %139 = vmatprep.subr.bf16.mxu0 %v177_v1 }
   0x4   :  { %8 = vsyncpa [#allocation4], 0  ;;  %v152_v3 = vld [vmem:[%s233_s0] sm:$0xff]   ;;  %s179_s0 = smov [#allocation3]  }
   0x5   :  { %v133_v12 = vld [vmem:[%s235_s2] ss:$0 sm:$0xff]  ;;  %s118_s19 = sshll.u32 %s179_s0, 4  ;;  %s119_s19 = int_to_ptr.vmem [resolvable:$true] %s118_s19 }
   0x6   :  { %140 = vmatpush3.bf16.msra.mxu0 %v151_v2  ;;  %s153_s20 = scalar_lea.vmem %s119_s19, 256  ;;  %p158_p1 = scmp.lt.s32.totalorder %s119_s19, %s119_s19 }
   0x7   :  { %p154_p0 = scmp.ne.s32.totalorder %s119_s19, %s153_s20  ;;  %p159_p2 = scmp.lt.s32.totalorder %s153_s20, %s153_s20 }
   0x8   :  { %v23_v4 = vld [vmem:[#allocation2] sm:$0xff]  ;;  %v24_v6 = vld [vmem:[#allocation2 + $0x8] sm:$0xff] }
   0x9   :  { %142 = vmatmul.mubr.msk.bf16.vlgmr.msra.gmra.mrb[0].mxu0 %vm20_vm1, %v152_v3  ;;  %p160_p3 = por %p159_p2, %p158_p1 }
   0xb   :  { %p161_p4 = pnand %p160_p3, %p154_p0 }
  0xdc   :  { %v86_v5 = vpop.f32.mrb[0].mxu0 }
  0xdd   :  { %v93_v7 = vadd.f32 %v86_v5, %v23_v4  ;;  %v143_v8 = vpop.f32.mrb[1].mxu0 }
  0xde   :  { %v89_v9 = vpop.f32.mrb[2].mxu0 }
  0xdf   :  { %95 = vst.msk [vmem:[#allocation2] sm:$0xff] %vm20_vm1, %v93_v7  ;;  %v94_v10 = vadd.f32 %v89_v9, %v24_v6  ;;  %v144_v11 = vpop.f32.mrb[3].mxu0 }
  0xe1   :  { %96 = vst.msk [vmem:[#allocation2 + $0x8] sm:$0xff] %vm20_vm1, %v94_v10 }
  0xe6   :  { %v100_v13 = vld [vmem:[#allocation2] sm:$0xff] }
  0xe7   :  { %v109_v14 = vadd.f32 %v133_v12, %v100_v13 }
  0xe8   :  { %v101_v15 = vld [vmem:[#allocation2 + $0x8] sm:$0xff] }
  0xe9   :  { %v110_v16 = vadd.f32 %v133_v12, %v101_v15  ;;  %111 = vst.msk [vmem:[#allocation3] sm:$0xff] %vm20_vm1, %v109_v14 }
  0xeb   :  { %112 = vst.msk [vmem:[#allocation3 + $0x8] sm:$0xff] %vm20_vm1, %v110_v16 }
  0xec   :  { %164 = shalt.err (!%p161_p4)
}
  0xed   :  { %s165_s22 = scalar_lea.hbm %s236_s3, 256 }
  0xee   :  { %p166_p5 = scmp.ne.s32.totalorder %s236_s3, %s165_s22  ;;  %p169_p6 = scmp.lt.u32.totalorder %s165_s22, %s236_s3 }
  0xf0   :  { %p171_p7 = pnand %p169_p6, %p166_p5 }
  0xf2   :  { %174 = shalt.err (!%p171_p7)
}
  0xf3   :  { %s180_s27 = smov 128   ;;  %s181_s28 = smov 8  }
  0xf4   :  { %124 = dma.vmem_to_hbm [thread:$0]  %s119_s19, 256, %s236_s3, [#allocation4], %s180_s27, %s180_s27, %s181_s28  }
  0xf5   :  { %175 = dma.done.wait [#allocation4], 256  }
  0xf6   :  { %176 = vsyncadd [#allocation4], 4294967040 }
  0xf7   :  { %128 = vsyncpa [#allocation4], 1 }

</bundles_post_ra>
